<compile_context>
chip_gen: v7x
topology: tpu7x:2x2x1
jax: 0.10.0
libtpu: 0.0.40
codegen_flags: <defaults>
</compile_context>

<pallas_src>
import functools

import numpy as np
import jax
import jax.numpy as jnp
from jax import lax
from jax.experimental import pallas as pl
from jax.experimental.pallas import tpu as pltpu


def _roi_pool_kernel(bi_ref, hs_ref, he_ref, ws_ref, we_ref,   # scalar prefetch (SMEM)
                     feat_ref, out_ref, *, pooled_h, pooled_w):
    r = pl.program_id(1)                        # ROI index (inner grid axis)
    feat = feat_ref[0].astype(jnp.float32)      # (H, W, Ct); cast hoisted, once
    H, W, Ct = feat.shape
    neg_inf = jnp.float32(-jnp.inf)

    # Spatial index grids (lane dim kept size-1; broadcasts along lanes only).
    h_idx = lax.broadcasted_iota(jnp.int32, (H, W, 1), 0)   # (H, W, 1)
    w_idx = lax.broadcasted_iota(jnp.int32, (W, 1), 0)      # (W, 1)

    for ph in range(pooled_h):
        hs = hs_ref[r * pooled_h + ph]
        he = he_ref[r * pooled_h + ph]
        # Row pass: masked max over H -> (W, Ct).  Per-lane VPU maxes across
        # spatial rows; only the final sublane fold touches the XLU.
        hmask = (h_idx >= hs) & (h_idx < he)                     # (H, W, 1)
        rows = jnp.max(jnp.where(hmask, feat, neg_inf), axis=0)  # (W, Ct)
        for pw in range(pooled_w):
            ws = ws_ref[r * pooled_w + pw]
            we = we_ref[r * pooled_w + pw]
            wmask = (w_idx >= ws) & (w_idx < we)                 # (W, 1)
            v = jnp.max(jnp.where(wmask, rows, neg_inf),
                        axis=0, keepdims=True)                   # (1, Ct)
            is_empty = jnp.logical_or(he <= hs, we <= ws)
            v = jnp.where(is_empty, jnp.zeros_like(v), v)
            # Store the bin result directly (lane-dense along C).
            out_ref[0, ph, pw:pw + 1, :] = v


def roi_pool(features, rois, pooled_height, pooled_width, spatial_scale):
    """Pallas RoIPool. features: (B, C, H, W); rois: (R, 5) f32 with rows
    (batch_idx, x1, y1, x2, y2).  Returns (R, C, PH, PW) float32."""
    B, C, H, W = features.shape
    R = rois.shape[0]
    PH, PW = int(pooled_height), int(pooled_width)
    scale = float(spatial_scale)

    # ---- glue: per-ROI / per-bin integer boundaries (small scalar math) ----
    batch_ind = rois[:, 0].astype(jnp.int32)                            # (R,)
    start_w = jnp.round(rois[:, 1] * scale).astype(jnp.int32)
    start_h = jnp.round(rois[:, 2] * scale).astype(jnp.int32)
    end_w = jnp.round(rois[:, 3] * scale).astype(jnp.int32)
    end_h = jnp.round(rois[:, 4] * scale).astype(jnp.int32)

    roi_w = jnp.maximum(end_w - start_w + 1, 1)                         # (R,)
    roi_h = jnp.maximum(end_h - start_h + 1, 1)

    ph = jnp.arange(PH, dtype=jnp.int32)[None, :]                       # (1, PH)
    pw = jnp.arange(PW, dtype=jnp.int32)[None, :]                       # (1, PW)
    # floor(ph*rh/PH) and ceil((ph+1)*rh/PH) done exactly in integer math.
    hstart = (ph * roi_h[:, None]) // PH
    hend = ((ph + 1) * roi_h[:, None] + PH - 1) // PH
    wstart = (pw * roi_w[:, None]) // PW
    wend = ((pw + 1) * roi_w[:, None] + PW - 1) // PW

    hstart = jnp.clip(hstart + start_h[:, None], 0, H).astype(jnp.int32)  # (R, PH)
    hend = jnp.clip(hend + start_h[:, None], 0, H).astype(jnp.int32)
    wstart = jnp.clip(wstart + start_w[:, None], 0, W).astype(jnp.int32)  # (R, PW)
    wend = jnp.clip(wend + start_w[:, None], 0, W).astype(jnp.int32)

    # Sort ROIs by batch index: consecutive grid steps then map to the same
    # feature block and Pallas skips the repeated HBM->VMEM copy.
    order = jnp.argsort(batch_ind)
    inv_order = jnp.argsort(order)
    batch_s = batch_ind[order]
    hs_s = hstart[order].reshape(-1)     # (R*PH,)  1D -> no SMEM lane padding
    he_s = hend[order].reshape(-1)
    ws_s = wstart[order].reshape(-1)     # (R*PW,)
    we_s = wend[order].reshape(-1)

    # Channels-last for the kernel: C on lanes, W on sublanes.
    feat_nhwc = jnp.transpose(features, (0, 2, 3, 1))    # (B, H, W, C)

    # Channel tiling: keep double-buffered feature blocks within a portable
    # VMEM budget (v5e 16 MiB scoped default, v7x 64 MiB physical).
    if C % 128 != 0:
        c_tile = C                      # small / odd C: take the full channel dim
    else:
        c_tile = 128
        budget = 12 * 1024 * 1024       # bytes for the double-buffered feat block
        while C % (2 * c_tile) == 0 and 2 * H * W * (2 * c_tile) * 4 <= budget:
            c_tile *= 2
    num_c = C // c_tile

    kernel = functools.partial(_roi_pool_kernel, pooled_h=PH, pooled_w=PW)

    grid_spec = pltpu.PrefetchScalarGridSpec(
        num_scalar_prefetch=5,
        grid=(num_c, R),    # ROI axis innermost: sorted ROIs reuse the feat DMA
        in_specs=[
            pl.BlockSpec((1, H, W, c_tile),
                         lambda c, r, bi, hs, he, ws, we: (bi[r], 0, 0, c)),
        ],
        out_specs=pl.BlockSpec((1, PH, PW, c_tile),
                               lambda c, r, bi, hs, he, ws, we: (r, 0, 0, c)),
    )

    vmem_bytes = 2 * (H * W * c_tile + PH * PW * c_tile) * 4 + (2 << 20)
    vmem_limit = int(min(max(vmem_bytes, 16 << 20), 64 << 20))

    out_nhwc = pl.pallas_call(
        kernel,
        grid_spec=grid_spec,
        out_shape=jax.ShapeDtypeStruct((R, PH, PW, C), jnp.float32),
        compiler_params=pltpu.CompilerParams(
            dimension_semantics=("parallel", "parallel"),
            vmem_limit_bytes=vmem_limit),
    )(batch_s, hs_s, he_s, ws_s, we_s, feat_nhwc)

    # Restore original ROI order and NCHW output layout.
    out_nhwc = out_nhwc[inv_order]
    return jnp.transpose(out_nhwc, (0, 3, 1, 2))        # (R, C, PH, PW)


def roi_pool_ref(features, rois, pooled_h, pooled_w, spatial_scale):
    """NumPy reference mirroring the PyTorch module."""
    features = np.asarray(features)
    rois = np.asarray(rois)
    B, C, H, W = features.shape
    R = rois.shape[0]
    out = np.zeros((R, C, pooled_h, pooled_w), np.float32)
    for ri in range(R):
        roi = rois[ri]
        b = int(roi[0])
        sw, sh, ew, eh = np.round(roi[1:] * spatial_scale).astype(int)
        rw = max(ew - sw + 1, 1)
        rh = max(eh - sh + 1, 1)
        bw = float(rw) / float(pooled_w)
        bh = float(rh) / float(pooled_h)
        for p in range(pooled_h):
            hs = int(np.floor(p * bh))
            he = int(np.ceil((p + 1) * bh))
            hs = min(H, max(0, hs + sh))
            he = min(H, max(0, he + sh))
            for q in range(pooled_w):
                ws = int(np.floor(q * bw))
                we = int(np.ceil((q + 1) * bw))
                ws = min(W, max(0, ws + sw))
                we = min(W, max(0, we + sw))
                if he <= hs or we <= ws:
                    out[ri, :, p, q] = 0.0
                else:
                    out[ri, :, p, q] = features[b, :, hs:he, ws:we].max(axis=(1, 2))
    return out


if __name__ == "__main__":
    # Module config
    pooled_height, pooled_width, spatial_scale = 4, 4, 0.5

    # Small deterministic inputs
    B, C, H, W = 2, 4, 16, 16
    R = 6
    key = jax.random.PRNGKey(0)
    k_feat, k_b, k_x1, k_y1, k_dx, k_dy = jax.random.split(key, 6)

    features = jax.random.normal(k_feat, (B, C, H, W), dtype=jnp.float32)

    batch = jax.random.randint(k_b, (R,), 0, B).astype(jnp.float32)
    x1 = jax.random.uniform(k_x1, (R,), minval=0.0, maxval=20.0)
    y1 = jax.random.uniform(k_y1, (R,), minval=0.0, maxval=20.0)
    x2 = jnp.minimum(x1 + jax.random.uniform(k_dx, (R,), minval=2.0, maxval=12.0), 31.0)
    y2 = jnp.minimum(y1 + jax.random.uniform(k_dy, (R,), minval=2.0, maxval=12.0), 31.0)
    rois = jnp.stack([batch, x1, y1, x2, y2], axis=1).astype(jnp.float32)  # (R, 5)

    out = roi_pool(features, rois, pooled_height, pooled_width, spatial_scale)
    out = jax.block_until_ready(out)

    ref = roi_pool_ref(features, rois, pooled_height, pooled_width, spatial_scale)
    assert out.shape == (R, C, pooled_height, pooled_width)
    assert out.dtype == jnp.float32
    np.testing.assert_allclose(np.asarray(out), ref, rtol=1e-6, atol=1e-6)

    print("KERNEL_OK")
</pallas_src>

<mosaic_0001>
module attributes {stable_mosaic.version = 11 : i64} {
  func.func @_roi_pool_kernel(%arg0: i32, %arg1: i32, %arg2: memref<6xi32, #tpu.memory_space<smem>>, %arg3: memref<24xi32, #tpu.memory_space<smem>>, %arg4: memref<24xi32, #tpu.memory_space<smem>>, %arg5: memref<24xi32, #tpu.memory_space<smem>>, %arg6: memref<24xi32, #tpu.memory_space<smem>>, %arg7: memref<1x16x16x4xf32, #tpu.memory_space<vmem>>, %arg8: memref<1x4x4x4xf32, #tpu.memory_space<vmem>>) attributes {dimension_semantics = [#tpu.dimension_semantics<parallel>, #tpu.dimension_semantics<parallel>], iteration_bounds = array<i64: 1, 6>, scalar_prefetch = 5 : i64, scratch_operands = 0 : i64, tpu.core_type = #tpu.core_type<tc>, window_params = [{transform_indices = @transform_0, window_bounds = array<i64: 1, 16, 16, 4>}, {transform_indices = @transform_1, window_bounds = array<i64: 1, 4, 4, 4>}]} {
    %c0 = arith.constant 0 : index
    %c0_0 = arith.constant 0 : index
    %c0_1 = arith.constant 0 : index
    %c0_2 = arith.constant 0 : index
    %0 = vector.load %arg7[%c0, %c0_0, %c0_1, %c0_2] : memref<1x16x16x4xf32, #tpu.memory_space<vmem>>, vector<1x16x16x4xf32>
    %1 = vector.shape_cast %0 : vector<1x16x16x4xf32> to vector<16x16x4xf32>
    %2 = tpu.iota {dimensions = array<i32: 0>} : vector<16x16x1xi32>
    %3 = tpu.iota {dimensions = array<i32: 0>} : vector<16x1xi32>
    %c4_i32 = arith.constant 4 : i32
    %4 = arith.muli %arg1, %c4_i32 : i32
    %c0_i32 = arith.constant 0 : i32
    %5 = arith.addi %4, %c0_i32 : i32
    %6 = arith.index_cast %5 : i32 to index
    %7 = memref.load %arg3[%6] : memref<24xi32, #tpu.memory_space<smem>>
    %c4_i32_3 = arith.constant 4 : i32
    %8 = arith.muli %arg1, %c4_i32_3 : i32
    %c0_i32_4 = arith.constant 0 : i32
    %9 = arith.addi %8, %c0_i32_4 : i32
    %10 = arith.index_cast %9 : i32 to index
    %11 = memref.load %arg4[%10] : memref<24xi32, #tpu.memory_space<smem>>
    %12 = vector.broadcast %7 : i32 to vector<16x16x1xi32>
    %13 = arith.cmpi sge, %2, %12 : vector<16x16x1xi32>
    %14 = vector.broadcast %11 : i32 to vector<16x16x1xi32>
    %15 = arith.cmpi slt, %2, %14 : vector<16x16x1xi32>
    %16 = arith.andi %13, %15 : vector<16x16x1xi1>
    %cst = arith.constant 0xFF800000 : f32
    %17 = vector.shape_cast %16 : vector<16x16x1xi1> to vector<16x16x1xi1>
    %18 = vector.broadcast %17 : vector<16x16x1xi1> to vector<16x16x4xi1>
    %19 = vector.broadcast %cst : f32 to vector<16x16x4xf32>
    %20 = arith.select %18, %1, %19 : vector<16x16x4xi1>, vector<16x16x4xf32>
    %cst_5 = arith.constant dense<0xFF800000> : vector<16x4xf32>
    %21 = vector.multi_reduction <maximumf>, %20, %cst_5 [0] : vector<16x16x4xf32> to vector<16x4xf32>
    %c4_i32_6 = arith.constant 4 : i32
    %22 = arith.muli %arg1, %c4_i32_6 : i32
    %c0_i32_7 = arith.constant 0 : i32
    %23 = arith.addi %22, %c0_i32_7 : i32
    %24 = arith.index_cast %23 : i32 to index
    %25 = memref.load %arg5[%24] : memref<24xi32, #tpu.memory_space<smem>>
    %c4_i32_8 = arith.constant 4 : i32
    %26 = arith.muli %arg1, %c4_i32_8 : i32
    %c0_i32_9 = arith.constant 0 : i32
    %27 = arith.addi %26, %c0_i32_9 : i32
    %28 = arith.index_cast %27 : i32 to index
    %29 = memref.load %arg6[%28] : memref<24xi32, #tpu.memory_space<smem>>
    %30 = vector.broadcast %25 : i32 to vector<16x1xi32>
    %31 = arith.cmpi sge, %3, %30 : vector<16x1xi32>
    %32 = vector.broadcast %29 : i32 to vector<16x1xi32>
    %33 = arith.cmpi slt, %3, %32 : vector<16x1xi32>
    %34 = arith.andi %31, %33 : vector<16x1xi1>
    %cst_10 = arith.constant 0xFF800000 : f32
    %35 = vector.shape_cast %34 : vector<16x1xi1> to vector<16x1xi1>
    %36 = vector.broadcast %35 : vector<16x1xi1> to vector<16x4xi1>
    %37 = vector.broadcast %cst_10 : f32 to vector<16x4xf32>
    %38 = arith.select %36, %21, %37 : vector<16x4xi1>, vector<16x4xf32>
    %cst_11 = arith.constant dense<0xFF800000> : vector<4xf32>
    %39 = vector.multi_reduction <maximumf>, %38, %cst_11 [0] : vector<16x4xf32> to vector<4xf32>
    %40 = vector.shape_cast %39 : vector<4xf32> to vector<1x4xf32>
    %41 = arith.cmpi sle, %11, %7 : i32
    %42 = arith.cmpi sle, %29, %25 : i32
    %43 = arith.ori %41, %42 : i1
    %cst_12 = arith.constant 0.000000e+00 : f32
    %44 = vector.broadcast %cst_12 : f32 to vector<1x4xf32>
    %45 = arith.select %43, %44, %40 : vector<1x4xf32>
    %c0_13 = arith.constant 0 : index
    %c0_14 = arith.constant 0 : index
    %c0_15 = arith.constant 0 : index
    %c0_16 = arith.constant 0 : index
    %46 = vector.load %arg8[%c0_13, %c0_14, %c0_15, %c0_16] : memref<1x4x4x4xf32, #tpu.memory_space<vmem>>, vector<1x1x1x4xf32>
    %47 = vector.shape_cast %46 : vector<1x1x1x4xf32> to vector<1x4xf32>
    %48 = vector.shape_cast %45 : vector<1x4xf32> to vector<1x1x1x4xf32>
    tpu.vector_store %arg8[%c0_13, %c0_14, %c0_15, %c0_16], %48 {strides = array<i32>} : memref<1x4x4x4xf32, #tpu.memory_space<vmem>>, vector<1x1x1x4xf32>,
    %c4_i32_17 = arith.constant 4 : i32
    %49 = arith.muli %arg1, %c4_i32_17 : i32
    %c1_i32 = arith.constant 1 : i32
    %50 = arith.addi %49, %c1_i32 : i32
    %51 = arith.index_cast %50 : i32 to index
    %52 = memref.load %arg5[%51] : memref<24xi32, #tpu.memory_space<smem>>
    %c4_i32_18 = arith.constant 4 : i32
    %53 = arith.muli %arg1, %c4_i32_18 : i32
    %c1_i32_19 = arith.constant 1 : i32
    %54 = arith.addi %53, %c1_i32_19 : i32
    %55 = arith.index_cast %54 : i32 to index
    %56 = memref.load %arg6[%55] : memref<24xi32, #tpu.memory_space<smem>>
    %57 = vector.broadcast %52 : i32 to vector<16x1xi32>
    %58 = arith.cmpi sge, %3, %57 : vector<16x1xi32>
    %59 = vector.broadcast %56 : i32 to vector<16x1xi32>
    %60 = arith.cmpi slt, %3, %59 : vector<16x1xi32>
    %61 = arith.andi %58, %60 : vector<16x1xi1>
    %cst_20 = arith.constant 0xFF800000 : f32
    %62 = vector.shape_cast %61 : vector<16x1xi1> to vector<16x1xi1>
    %63 = vector.broadcast %62 : vector<16x1xi1> to vector<16x4xi1>
    %64 = vector.broadcast %cst_20 : f32 to vector<16x4xf32>
    %65 = arith.select %63, %21, %64 : vector<16x4xi1>, vector<16x4xf32>
    %cst_21 = arith.constant dense<0xFF800000> : vector<4xf32>
    %66 = vector.multi_reduction <maximumf>, %65, %cst_21 [0] : vector<16x4xf32> to vector<4xf32>
    %67 = vector.shape_cast %66 : vector<4xf32> to vector<1x4xf32>
    %68 = arith.cmpi sle, %11, %7 : i32
    %69 = arith.cmpi sle, %56, %52 : i32
    %70 = arith.ori %68, %69 : i1
    %cst_22 = arith.constant 0.000000e+00 : f32
    %71 = vector.broadcast %cst_22 : f32 to vector<1x4xf32>
    %72 = arith.select %70, %71, %67 : vector<1x4xf32>
    %c0_23 = arith.constant 0 : index
    %c0_24 = arith.constant 0 : index
    %c1 = arith.constant 1 : index
    %c0_25 = arith.constant 0 : index
    %73 = vector.load %arg8[%c0_23, %c0_24, %c1, %c0_25] : memref<1x4x4x4xf32, #tpu.memory_space<vmem>>, vector<1x1x1x4xf32>
    %74 = vector.shape_cast %73 : vector<1x1x1x4xf32> to vector<1x4xf32>
    %75 = vector.shape_cast %72 : vector<1x4xf32> to vector<1x1x1x4xf32>
    tpu.vector_store %arg8[%c0_23, %c0_24, %c1, %c0_25], %75 {strides = array<i32>} : memref<1x4x4x4xf32, #tpu.memory_space<vmem>>, vector<1x1x1x4xf32>,
    %c4_i32_26 = arith.constant 4 : i32
    %76 = arith.muli %arg1, %c4_i32_26 : i32
    %c2_i32 = arith.constant 2 : i32
    %77 = arith.addi %76, %c2_i32 : i32
    %78 = arith.index_cast %77 : i32 to index
    %79 = memref.load %arg5[%78] : memref<24xi32, #tpu.memory_space<smem>>
    %c4_i32_27 = arith.constant 4 : i32
    %80 = arith.muli %arg1, %c4_i32_27 : i32
    %c2_i32_28 = arith.constant 2 : i32
    %81 = arith.addi %80, %c2_i32_28 : i32
    %82 = arith.index_cast %81 : i32 to index
    %83 = memref.load %arg6[%82] : memref<24xi32, #tpu.memory_space<smem>>
    %84 = vector.broadcast %79 : i32 to vector<16x1xi32>
    %85 = arith.cmpi sge, %3, %84 : vector<16x1xi32>
    %86 = vector.broadcast %83 : i32 to vector<16x1xi32>
    %87 = arith.cmpi slt, %3, %86 : vector<16x1xi32>
    %88 = arith.andi %85, %87 : vector<16x1xi1>
    %cst_29 = arith.constant 0xFF800000 : f32
    %89 = vector.shape_cast %88 : vector<16x1xi1> to vector<16x1xi1>
    %90 = vector.broadcast %89 : vector<16x1xi1> to vector<16x4xi1>
    %91 = vector.broadcast %cst_29 : f32 to vector<16x4xf32>
    %92 = arith.select %90, %21, %91 : vector<16x4xi1>, vector<16x4xf32>
    %cst_30 = arith.constant dense<0xFF800000> : vector<4xf32>
    %93 = vector.multi_reduction <maximumf>, %92, %cst_30 [0] : vector<16x4xf32> to vector<4xf32>
    %94 = vector.shape_cast %93 : vector<4xf32> to vector<1x4xf32>
    %95 = arith.cmpi sle, %11, %7 : i32
    %96 = arith.cmpi sle, %83, %79 : i32
    %97 = arith.ori %95, %96 : i1
    %cst_31 = arith.constant 0.000000e+00 : f32
    %98 = vector.broadcast %cst_31 : f32 to vector<1x4xf32>
    %99 = arith.select %97, %98, %94 : vector<1x4xf32>
    %c0_32 = arith.constant 0 : index
    %c0_33 = arith.constant 0 : index
    %c2 = arith.constant 2 : index
    %c0_34 = arith.constant 0 : index
    %100 = vector.load %arg8[%c0_32, %c0_33, %c2, %c0_34] : memref<1x4x4x4xf32, #tpu.memory_space<vmem>>, vector<1x1x1x4xf32>
    %101 = vector.shape_cast %100 : vector<1x1x1x4xf32> to vector<1x4xf32>
    %102 = vector.shape_cast %99 : vector<1x4xf32> to vector<1x1x1x4xf32>
    tpu.vector_store %arg8[%c0_32, %c0_33, %c2, %c0_34], %102 {strides = array<i32>} : memref<1x4x4x4xf32, #tpu.memory_space<vmem>>, vector<1x1x1x4xf32>,
    %c4_i32_35 = arith.constant 4 : i32
    %103 = arith.muli %arg1, %c4_i32_35 : i32
    %c3_i32 = arith.constant 3 : i32
    %104 = arith.addi %103, %c3_i32 : i32
    %105 = arith.index_cast %104 : i32 to index
    %106 = memref.load %arg5[%105] : memref<24xi32, #tpu.memory_space<smem>>
    %c4_i32_36 = arith.constant 4 : i32
    %107 = arith.muli %arg1, %c4_i32_36 : i32
    %c3_i32_37 = arith.constant 3 : i32
    %108 = arith.addi %107, %c3_i32_37 : i32
    %109 = arith.index_cast %108 : i32 to index
    %110 = memref.load %arg6[%109] : memref<24xi32, #tpu.memory_space<smem>>
    %111 = vector.broadcast %106 : i32 to vector<16x1xi32>
    %112 = arith.cmpi sge, %3, %111 : vector<16x1xi32>
    %113 = vector.broadcast %110 : i32 to vector<16x1xi32>
    %114 = arith.cmpi slt, %3, %113 : vector<16x1xi32>
    %115 = arith.andi %112, %114 : vector<16x1xi1>
    %cst_38 = arith.constant 0xFF800000 : f32
    %116 = vector.shape_cast %115 : vector<16x1xi1> to vector<16x1xi1>
    %117 = vector.broadcast %116 : vector<16x1xi1> to vector<16x4xi1>
    %118 = vector.broadcast %cst_38 : f32 to vector<16x4xf32>
    %119 = arith.select %117, %21, %118 : vector<16x4xi1>, vector<16x4xf32>
    %cst_39 = arith.constant dense<0xFF800000> : vector<4xf32>
    %120 = vector.multi_reduction <maximumf>, %119, %cst_39 [0] : vector<16x4xf32> to vector<4xf32>
    %121 = vector.shape_cast %120 : vector<4xf32> to vector<1x4xf32>
    %122 = arith.cmpi sle, %11, %7 : i32
    %123 = arith.cmpi sle, %110, %106 : i32
    %124 = arith.ori %122, %123 : i1
    %cst_40 = arith.constant 0.000000e+00 : f32
    %125 = vector.broadcast %cst_40 : f32 to vector<1x4xf32>
    %126 = arith.select %124, %125, %121 : vector<1x4xf32>
    %c0_41 = arith.constant 0 : index
    %c0_42 = arith.constant 0 : index
    %c3 = arith.constant 3 : index
    %c0_43 = arith.constant 0 : index
    %127 = vector.load %arg8[%c0_41, %c0_42, %c3, %c0_43] : memref<1x4x4x4xf32, #tpu.memory_space<vmem>>, vector<1x1x1x4xf32>
    %128 = vector.shape_cast %127 : vector<1x1x1x4xf32> to vector<1x4xf32>
    %129 = vector.shape_cast %126 : vector<1x4xf32> to vector<1x1x1x4xf32>
    tpu.vector_store %arg8[%c0_41, %c0_42, %c3, %c0_43], %129 {strides = array<i32>} : memref<1x4x4x4xf32, #tpu.memory_space<vmem>>, vector<1x1x1x4xf32>,
    %c4_i32_44 = arith.constant 4 : i32
    %130 = arith.muli %arg1, %c4_i32_44 : i32
    %c1_i32_45 = arith.constant 1 : i32
    %131 = arith.addi %130, %c1_i32_45 : i32
    %132 = arith.index_cast %131 : i32 to index
    %133 = memref.load %arg3[%132] : memref<24xi32, #tpu.memory_space<smem>>
    %c4_i32_46 = arith.constant 4 : i32
    %134 = arith.muli %arg1, %c4_i32_46 : i32
    %c1_i32_47 = arith.constant 1 : i32
    %135 = arith.addi %134, %c1_i32_47 : i32
    %136 = arith.index_cast %135 : i32 to index
    %137 = memref.load %arg4[%136] : memref<24xi32, #tpu.memory_space<smem>>
    %138 = vector.broadcast %133 : i32 to vector<16x16x1xi32>
    %139 = arith.cmpi sge, %2, %138 : vector<16x16x1xi32>
    %140 = vector.broadcast %137 : i32 to vector<16x16x1xi32>
    %141 = arith.cmpi slt, %2, %140 : vector<16x16x1xi32>
    %142 = arith.andi %139, %141 : vector<16x16x1xi1>
    %cst_48 = arith.constant 0xFF800000 : f32
    %143 = vector.shape_cast %142 : vector<16x16x1xi1> to vector<16x16x1xi1>
    %144 = vector.broadcast %143 : vector<16x16x1xi1> to vector<16x16x4xi1>
    %145 = vector.broadcast %cst_48 : f32 to vector<16x16x4xf32>
    %146 = arith.select %144, %1, %145 : vector<16x16x4xi1>, vector<16x16x4xf32>
    %cst_49 = arith.constant dense<0xFF800000> : vector<16x4xf32>
    %147 = vector.multi_reduction <maximumf>, %146, %cst_49 [0] : vector<16x16x4xf32> to vector<16x4xf32>
    %c4_i32_50 = arith.constant 4 : i32
    %148 = arith.muli %arg1, %c4_i32_50 : i32
    %c0_i32_51 = arith.constant 0 : i32
    %149 = arith.addi %148, %c0_i32_51 : i32
    %150 = arith.index_cast %149 : i32 to index
    %151 = memref.load %arg5[%150] : memref<24xi32, #tpu.memory_space<smem>>
    %c4_i32_52 = arith.constant 4 : i32
    %152 = arith.muli %arg1, %c4_i32_52 : i32
    %c0_i32_53 = arith.constant 0 : i32
    %153 = arith.addi %152, %c0_i32_53 : i32
    %154 = arith.index_cast %153 : i32 to index
    %155 = memref.load %arg6[%154] : memref<24xi32, #tpu.memory_space<smem>>
    %156 = vector.broadcast %151 : i32 to vector<16x1xi32>
    %157 = arith.cmpi sge, %3, %156 : vector<16x1xi32>
    %158 = vector.broadcast %155 : i32 to vector<16x1xi32>
    %159 = arith.cmpi slt, %3, %158 : vector<16x1xi32>
    %160 = arith.andi %157, %159 : vector<16x1xi1>
    %cst_54 = arith.constant 0xFF800000 : f32
    %161 = vector.shape_cast %160 : vector<16x1xi1> to vector<16x1xi1>
    %162 = vector.broadcast %161 : vector<16x1xi1> to vector<16x4xi1>
    %163 = vector.broadcast %cst_54 : f32 to vector<16x4xf32>
    %164 = arith.select %162, %147, %163 : vector<16x4xi1>, vector<16x4xf32>
    %cst_55 = arith.constant dense<0xFF800000> : vector<4xf32>
    %165 = vector.multi_reduction <maximumf>, %164, %cst_55 [0] : vector<16x4xf32> to vector<4xf32>
    %166 = vector.shape_cast %165 : vector<4xf32> to vector<1x4xf32>
    %167 = arith.cmpi sle, %137, %133 : i32
    %168 = arith.cmpi sle, %155, %151 : i32
    %169 = arith.ori %167, %168 : i1
    %cst_56 = arith.constant 0.000000e+00 : f32
    %170 = vector.broadcast %cst_56 : f32 to vector<1x4xf32>
    %171 = arith.select %169, %170, %166 : vector<1x4xf32>
    %c0_57 = arith.constant 0 : index
    %c1_58 = arith.constant 1 : index
    %c0_59 = arith.constant 0 : index
    %c0_60 = arith.constant 0 : index
    %172 = vector.load %arg8[%c0_57, %c1_58, %c0_59, %c0_60] : memref<1x4x4x4xf32, #tpu.memory_space<vmem>>, vector<1x1x1x4xf32>
    %173 = vector.shape_cast %172 : vector<1x1x1x4xf32> to vector<1x4xf32>
    %174 = vector.shape_cast %171 : vector<1x4xf32> to vector<1x1x1x4xf32>
    tpu.vector_store %arg8[%c0_57, %c1_58, %c0_59, %c0_60], %174 {strides = array<i32>} : memref<1x4x4x4xf32, #tpu.memory_space<vmem>>, vector<1x1x1x4xf32>,
    %c4_i32_61 = arith.constant 4 : i32
    %175 = arith.muli %arg1, %c4_i32_61 : i32
    %c1_i32_62 = arith.constant 1 : i32
    %176 = arith.addi %175, %c1_i32_62 : i32
    %177 = arith.index_cast %176 : i32 to index
    %178 = memref.load %arg5[%177] : memref<24xi32, #tpu.memory_space<smem>>
    %c4_i32_63 = arith.constant 4 : i32
    %179 = arith.muli %arg1, %c4_i32_63 : i32
    %c1_i32_64 = arith.constant 1 : i32
    %180 = arith.addi %179, %c1_i32_64 : i32
    %181 = arith.index_cast %180 : i32 to index
    %182 = memref.load %arg6[%181] : memref<24xi32, #tpu.memory_space<smem>>
    %183 = vector.broadcast %178 : i32 to vector<16x1xi32>
    %184 = arith.cmpi sge, %3, %183 : vector<16x1xi32>
    %185 = vector.broadcast %182 : i32 to vector<16x1xi32>
    %186 = arith.cmpi slt, %3, %185 : vector<16x1xi32>
    %187 = arith.andi %184, %186 : vector<16x1xi1>
    %cst_65 = arith.constant 0xFF800000 : f32
    %188 = vector.shape_cast %187 : vector<16x1xi1> to vector<16x1xi1>
    %189 = vector.broadcast %188 : vector<16x1xi1> to vector<16x4xi1>
    %190 = vector.broadcast %cst_65 : f32 to vector<16x4xf32>
    %191 = arith.select %189, %147, %190 : vector<16x4xi1>, vector<16x4xf32>
    %cst_66 = arith.constant dense<0xFF800000> : vector<4xf32>
    %192 = vector.multi_reduction <maximumf>, %191, %cst_66 [0] : vector<16x4xf32> to vector<4xf32>
    %193 = vector.shape_cast %192 : vector<4xf32> to vector<1x4xf32>
    %194 = arith.cmpi sle, %137, %133 : i32
    %195 = arith.cmpi sle, %182, %178 : i32
    %196 = arith.ori %194, %195 : i1
    %cst_67 = arith.constant 0.000000e+00 : f32
    %197 = vector.broadcast %cst_67 : f32 to vector<1x4xf32>
    %198 = arith.select %196, %197, %193 : vector<1x4xf32>
    %c0_68 = arith.constant 0 : index
    %c1_69 = arith.constant 1 : index
    %c1_70 = arith.constant 1 : index
    %c0_71 = arith.constant 0 : index
    %199 = vector.load %arg8[%c0_68, %c1_69, %c1_70, %c0_71] : memref<1x4x4x4xf32, #tpu.memory_space<vmem>>, vector<1x1x1x4xf32>
    %200 = vector.shape_cast %199 : vector<1x1x1x4xf32> to vector<1x4xf32>
    %201 = vector.shape_cast %198 : vector<1x4xf32> to vector<1x1x1x4xf32>
    tpu.vector_store %arg8[%c0_68, %c1_69, %c1_70, %c0_71], %201 {strides = array<i32>} : memref<1x4x4x4xf32, #tpu.memory_space<vmem>>, vector<1x1x1x4xf32>,
    %c4_i32_72 = arith.constant 4 : i32
    %202 = arith.muli %arg1, %c4_i32_72 : i32
    %c2_i32_73 = arith.constant 2 : i32
    %203 = arith.addi %202, %c2_i32_73 : i32
    %204 = arith.index_cast %203 : i32 to index
    %205 = memref.load %arg5[%204] : memref<24xi32, #tpu.memory_space<smem>>
    %c4_i32_74 = arith.constant 4 : i32
    %206 = arith.muli %arg1, %c4_i32_74 : i32
    %c2_i32_75 = arith.constant 2 : i32
    %207 = arith.addi %206, %c2_i32_75 : i32
    %208 = arith.index_cast %207 : i32 to index
    %209 = memref.load %arg6[%208] : memref<24xi32, #tpu.memory_space<smem>>
    %210 = vector.broadcast %205 : i32 to vector<16x1xi32>
    %211 = arith.cmpi sge, %3, %210 : vector<16x1xi32>
    %212 = vector.broadcast %209 : i32 to vector<16x1xi32>
    %213 = arith.cmpi slt, %3, %212 : vector<16x1xi32>
    %214 = arith.andi %211, %213 : vector<16x1xi1>
    %cst_76 = arith.constant 0xFF800000 : f32
    %215 = vector.shape_cast %214 : vector<16x1xi1> to vector<16x1xi1>
    %216 = vector.broadcast %215 : vector<16x1xi1> to vector<16x4xi1>
    %217 = vector.broadcast %cst_76 : f32 to vector<16x4xf32>
    %218 = arith.select %216, %147, %217 : vector<16x4xi1>, vector<16x4xf32>
    %cst_77 = arith.constant dense<0xFF800000> : vector<4xf32>
    %219 = vector.multi_reduction <maximumf>, %218, %cst_77 [0] : vector<16x4xf32> to vector<4xf32>
    %220 = vector.shape_cast %219 : vector<4xf32> to vector<1x4xf32>
    %221 = arith.cmpi sle, %137, %133 : i32
    %222 = arith.cmpi sle, %209, %205 : i32
    %223 = arith.ori %221, %222 : i1
    %cst_78 = arith.constant 0.000000e+00 : f32
    %224 = vector.broadcast %cst_78 : f32 to vector<1x4xf32>
    %225 = arith.select %223, %224, %220 : vector<1x4xf32>
    %c0_79 = arith.constant 0 : index
    %c1_80 = arith.constant 1 : index
    %c2_81 = arith.constant 2 : index
    %c0_82 = arith.constant 0 : index
    %226 = vector.load %arg8[%c0_79, %c1_80, %c2_81, %c0_82] : memref<1x4x4x4xf32, #tpu.memory_space<vmem>>, vector<1x1x1x4xf32>
    %227 = vector.shape_cast %226 : vector<1x1x1x4xf32> to vector<1x4xf32>
    %228 = vector.shape_cast %225 : vector<1x4xf32> to vector<1x1x1x4xf32>
    tpu.vector_store %arg8[%c0_79, %c1_80, %c2_81, %c0_82], %228 {strides = array<i32>} : memref<1x4x4x4xf32, #tpu.memory_space<vmem>>, vector<1x1x1x4xf32>,
    %c4_i32_83 = arith.constant 4 : i32
    %229 = arith.muli %arg1, %c4_i32_83 : i32
    %c3_i32_84 = arith.constant 3 : i32
    %230 = arith.addi %229, %c3_i32_84 : i32
    %231 = arith.index_cast %230 : i32 to index
    %232 = memref.load %arg5[%231] : memref<24xi32, #tpu.memory_space<smem>>
    %c4_i32_85 = arith.constant 4 : i32
    %233 = arith.muli %arg1, %c4_i32_85 : i32
    %c3_i32_86 = arith.constant 3 : i32
    %234 = arith.addi %233, %c3_i32_86 : i32
    %235 = arith.index_cast %234 : i32 to index
    %236 = memref.load %arg6[%235] : memref<24xi32, #tpu.memory_space<smem>>
    %237 = vector.broadcast %232 : i32 to vector<16x1xi32>
    %238 = arith.cmpi sge, %3, %237 : vector<16x1xi32>
    %239 = vector.broadcast %236 : i32 to vector<16x1xi32>
    %240 = arith.cmpi slt, %3, %239 : vector<16x1xi32>
    %241 = arith.andi %238, %240 : vector<16x1xi1>
    %cst_87 = arith.constant 0xFF800000 : f32
    %242 = vector.shape_cast %241 : vector<16x1xi1> to vector<16x1xi1>
    %243 = vector.broadcast %242 : vector<16x1xi1> to vector<16x4xi1>
    %244 = vector.broadcast %cst_87 : f32 to vector<16x4xf32>
    %245 = arith.select %243, %147, %244 : vector<16x4xi1>, vector<16x4xf32>
    %cst_88 = arith.constant dense<0xFF800000> : vector<4xf32>
    %246 = vector.multi_reduction <maximumf>, %245, %cst_88 [0] : vector<16x4xf32> to vector<4xf32>
    %247 = vector.shape_cast %246 : vector<4xf32> to vector<1x4xf32>
    %248 = arith.cmpi sle, %137, %133 : i32
    %249 = arith.cmpi sle, %236, %232 : i32
    %250 = arith.ori %248, %249 : i1
    %cst_89 = arith.constant 0.000000e+00 : f32
    %251 = vector.broadcast %cst_89 : f32 to vector<1x4xf32>
    %252 = arith.select %250, %251, %247 : vector<1x4xf32>
    %c0_90 = arith.constant 0 : index
    %c1_91 = arith.constant 1 : index
    %c3_92 = arith.constant 3 : index
    %c0_93 = arith.constant 0 : index
    %253 = vector.load %arg8[%c0_90, %c1_91, %c3_92, %c0_93] : memref<1x4x4x4xf32, #tpu.memory_space<vmem>>, vector<1x1x1x4xf32>
    %254 = vector.shape_cast %253 : vector<1x1x1x4xf32> to vector<1x4xf32>
    %255 = vector.shape_cast %252 : vector<1x4xf32> to vector<1x1x1x4xf32>
    tpu.vector_store %arg8[%c0_90, %c1_91, %c3_92, %c0_93], %255 {strides = array<i32>} : memref<1x4x4x4xf32, #tpu.memory_space<vmem>>, vector<1x1x1x4xf32>,
    %c4_i32_94 = arith.constant 4 : i32
    %256 = arith.muli %arg1, %c4_i32_94 : i32
    %c2_i32_95 = arith.constant 2 : i32
    %257 = arith.addi %256, %c2_i32_95 : i32
    %258 = arith.index_cast %257 : i32 to index
    %259 = memref.load %arg3[%258] : memref<24xi32, #tpu.memory_space<smem>>
    %c4_i32_96 = arith.constant 4 : i32
    %260 = arith.muli %arg1, %c4_i32_96 : i32
    %c2_i32_97 = arith.constant 2 : i32
    %261 = arith.addi %260, %c2_i32_97 : i32
    %262 = arith.index_cast %261 : i32 to index
    %263 = memref.load %arg4[%262] : memref<24xi32, #tpu.memory_space<smem>>
    %264 = vector.broadcast %259 : i32 to vector<16x16x1xi32>
    %265 = arith.cmpi sge, %2, %264 : vector<16x16x1xi32>
    %266 = vector.broadcast %263 : i32 to vector<16x16x1xi32>
    %267 = arith.cmpi slt, %2, %266 : vector<16x16x1xi32>
    %268 = arith.andi %265, %267 : vector<16x16x1xi1>
    %cst_98 = arith.constant 0xFF800000 : f32
    %269 = vector.shape_cast %268 : vector<16x16x1xi1> to vector<16x16x1xi1>
    %270 = vector.broadcast %269 : vector<16x16x1xi1> to vector<16x16x4xi1>
    %271 = vector.broadcast %cst_98 : f32 to vector<16x16x4xf32>
    %272 = arith.select %270, %1, %271 : vector<16x16x4xi1>, vector<16x16x4xf32>
    %cst_99 = arith.constant dense<0xFF800000> : vector<16x4xf32>
    %273 = vector.multi_reduction <maximumf>, %272, %cst_99 [0] : vector<16x16x4xf32> to vector<16x4xf32>
    %c4_i32_100 = arith.constant 4 : i32
    %274 = arith.muli %arg1, %c4_i32_100 : i32
    %c0_i32_101 = arith.constant 0 : i32
    %275 = arith.addi %274, %c0_i32_101 : i32
    %276 = arith.index_cast %275 : i32 to index
    %277 = memref.load %arg5[%276] : memref<24xi32, #tpu.memory_space<smem>>
    %c4_i32_102 = arith.constant 4 : i32
    %278 = arith.muli %arg1, %c4_i32_102 : i32
    %c0_i32_103 = arith.constant 0 : i32
    %279 = arith.addi %278, %c0_i32_103 : i32
    %280 = arith.index_cast %279 : i32 to index
    %281 = memref.load %arg6[%280] : memref<24xi32, #tpu.memory_space<smem>>
    %282 = vector.broadcast %277 : i32 to vector<16x1xi32>
    %283 = arith.cmpi sge, %3, %282 : vector<16x1xi32>
    %284 = vector.broadcast %281 : i32 to vector<16x1xi32>
    %285 = arith.cmpi slt, %3, %284 : vector<16x1xi32>
    %286 = arith.andi %283, %285 : vector<16x1xi1>
    %cst_104 = arith.constant 0xFF800000 : f32
    %287 = vector.shape_cast %286 : vector<16x1xi1> to vector<16x1xi1>
    %288 = vector.broadcast %287 : vector<16x1xi1> to vector<16x4xi1>
    %289 = vector.broadcast %cst_104 : f32 to vector<16x4xf32>
    %290 = arith.select %288, %273, %289 : vector<16x4xi1>, vector<16x4xf32>
    %cst_105 = arith.constant dense<0xFF800000> : vector<4xf32>
    %291 = vector.multi_reduction <maximumf>, %290, %cst_105 [0] : vector<16x4xf32> to vector<4xf32>
    %292 = vector.shape_cast %291 : vector<4xf32> to vector<1x4xf32>
    %293 = arith.cmpi sle, %263, %259 : i32
    %294 = arith.cmpi sle, %281, %277 : i32
    %295 = arith.ori %293, %294 : i1
    %cst_106 = arith.constant 0.000000e+00 : f32
    %296 = vector.broadcast %cst_106 : f32 to vector<1x4xf32>
    %297 = arith.select %295, %296, %292 : vector<1x4xf32>
    %c0_107 = arith.constant 0 : index
    %c2_108 = arith.constant 2 : index
    %c0_109 = arith.constant 0 : index
    %c0_110 = arith.constant 0 : index
    %298 = vector.load %arg8[%c0_107, %c2_108, %c0_109, %c0_110] : memref<1x4x4x4xf32, #tpu.memory_space<vmem>>, vector<1x1x1x4xf32>
    %299 = vector.shape_cast %298 : vector<1x1x1x4xf32> to vector<1x4xf32>
    %300 = vector.shape_cast %297 : vector<1x4xf32> to vector<1x1x1x4xf32>
    tpu.vector_store %arg8[%c0_107, %c2_108, %c0_109, %c0_110], %300 {strides = array<i32>} : memref<1x4x4x4xf32, #tpu.memory_space<vmem>>, vector<1x1x1x4xf32>,
    %c4_i32_111 = arith.constant 4 : i32
    %301 = arith.muli %arg1, %c4_i32_111 : i32
    %c1_i32_112 = arith.constant 1 : i32
    %302 = arith.addi %301, %c1_i32_112 : i32
    %303 = arith.index_cast %302 : i32 to index
    %304 = memref.load %arg5[%303] : memref<24xi32, #tpu.memory_space<smem>>
    %c4_i32_113 = arith.constant 4 : i32
    %305 = arith.muli %arg1, %c4_i32_113 : i32
    %c1_i32_114 = arith.constant 1 : i32
    %306 = arith.addi %305, %c1_i32_114 : i32
    %307 = arith.index_cast %306 : i32 to index
    %308 = memref.load %arg6[%307] : memref<24xi32, #tpu.memory_space<smem>>
    %309 = vector.broadcast %304 : i32 to vector<16x1xi32>
    %310 = arith.cmpi sge, %3, %309 : vector<16x1xi32>
    %311 = vector.broadcast %308 : i32 to vector<16x1xi32>
    %312 = arith.cmpi slt, %3, %311 : vector<16x1xi32>
    %313 = arith.andi %310, %312 : vector<16x1xi1>
    %cst_115 = arith.constant 0xFF800000 : f32
    %314 = vector.shape_cast %313 : vector<16x1xi1> to vector<16x1xi1>
    %315 = vector.broadcast %314 : vector<16x1xi1> to vector<16x4xi1>
    %316 = vector.broadcast %cst_115 : f32 to vector<16x4xf32>
    %317 = arith.select %315, %273, %316 : vector<16x4xi1>, vector<16x4xf32>
    %cst_116 = arith.constant dense<0xFF800000> : vector<4xf32>
    %318 = vector.multi_reduction <maximumf>, %317, %cst_116 [0] : vector<16x4xf32> to vector<4xf32>
    %319 = vector.shape_cast %318 : vector<4xf32> to vector<1x4xf32>
    %320 = arith.cmpi sle, %263, %259 : i32
    %321 = arith.cmpi sle, %308, %304 : i32
    %322 = arith.ori %320, %321 : i1
    %cst_117 = arith.constant 0.000000e+00 : f32
    %323 = vector.broadcast %cst_117 : f32 to vector<1x4xf32>
    %324 = arith.select %322, %323, %319 : vector<1x4xf32>
    %c0_118 = arith.constant 0 : index
    %c2_119 = arith.constant 2 : index
    %c1_120 = arith.constant 1 : index
    %c0_121 = arith.constant 0 : index
    %325 = vector.load %arg8[%c0_118, %c2_119, %c1_120, %c0_121] : memref<1x4x4x4xf32, #tpu.memory_space<vmem>>, vector<1x1x1x4xf32>
    %326 = vector.shape_cast %325 : vector<1x1x1x4xf32> to vector<1x4xf32>
    %327 = vector.shape_cast %324 : vector<1x4xf32> to vector<1x1x1x4xf32>
    tpu.vector_store %arg8[%c0_118, %c2_119, %c1_120, %c0_121], %327 {strides = array<i32>} : memref<1x4x4x4xf32, #tpu.memory_space<vmem>>, vector<1x1x1x4xf32>,
    %c4_i32_122 = arith.constant 4 : i32
    %328 = arith.muli %arg1, %c4_i32_122 : i32
    %c2_i32_123 = arith.constant 2 : i32
    %329 = arith.addi %328, %c2_i32_123 : i32
    %330 = arith.index_cast %329 : i32 to index
    %331 = memref.load %arg5[%330] : memref<24xi32, #tpu.memory_space<smem>>
    %c4_i32_124 = arith.constant 4 : i32
    %332 = arith.muli %arg1, %c4_i32_124 : i32
    %c2_i32_125 = arith.constant 2 : i32
    %333 = arith.addi %332, %c2_i32_125 : i32
    %334 = arith.index_cast %333 : i32 to index
    %335 = memref.load %arg6[%334] : memref<24xi32, #tpu.memory_space<smem>>
    %336 = vector.broadcast %331 : i32 to vector<16x1xi32>
    %337 = arith.cmpi sge, %3, %336 : vector<16x1xi32>
    %338 = vector.broadcast %335 : i32 to vector<16x1xi32>
    %339 = arith.cmpi slt, %3, %338 : vector<16x1xi32>
    %340 = arith.andi %337, %339 : vector<16x1xi1>
    %cst_126 = arith.constant 0xFF800000 : f32
    %341 = vector.shape_cast %340 : vector<16x1xi1> to vector<16x1xi1>
    %342 = vector.broadcast %341 : vector<16x1xi1> to vector<16x4xi1>
    %343 = vector.broadcast %cst_126 : f32 to vector<16x4xf32>
    %344 = arith.select %342, %273, %343 : vector<16x4xi1>, vector<16x4xf32>
    %cst_127 = arith.constant dense<0xFF800000> : vector<4xf32>
    %345 = vector.multi_reduction <maximumf>, %344, %cst_127 [0] : vector<16x4xf32> to vector<4xf32>
    %346 = vector.shape_cast %345 : vector<4xf32> to vector<1x4xf32>
    %347 = arith.cmpi sle, %263, %259 : i32
    %348 = arith.cmpi sle, %335, %331 : i32
    %349 = arith.ori %347, %348 : i1
    %cst_128 = arith.constant 0.000000e+00 : f32
    %350 = vector.broadcast %cst_128 : f32 to vector<1x4xf32>
    %351 = arith.select %349, %350, %346 : vector<1x4xf32>
    %c0_129 = arith.constant 0 : index
    %c2_130 = arith.constant 2 : index
    %c2_131 = arith.constant 2 : index
    %c0_132 = arith.constant 0 : index
    %352 = vector.load %arg8[%c0_129, %c2_130, %c2_131, %c0_132] : memref<1x4x4x4xf32, #tpu.memory_space<vmem>>, vector<1x1x1x4xf32>
    %353 = vector.shape_cast %352 : vector<1x1x1x4xf32> to vector<1x4xf32>
    %354 = vector.shape_cast %351 : vector<1x4xf32> to vector<1x1x1x4xf32>
    tpu.vector_store %arg8[%c0_129, %c2_130, %c2_131, %c0_132], %354 {strides = array<i32>} : memref<1x4x4x4xf32, #tpu.memory_space<vmem>>, vector<1x1x1x4xf32>,
    %c4_i32_133 = arith.constant 4 : i32
    %355 = arith.muli %arg1, %c4_i32_133 : i32
    %c3_i32_134 = arith.constant 3 : i32
    %356 = arith.addi %355, %c3_i32_134 : i32
    %357 = arith.index_cast %356 : i32 to index
    %358 = memref.load %arg5[%357] : memref<24xi32, #tpu.memory_space<smem>>
    %c4_i32_135 = arith.constant 4 : i32
    %359 = arith.muli %arg1, %c4_i32_135 : i32
    %c3_i32_136 = arith.constant 3 : i32
    %360 = arith.addi %359, %c3_i32_136 : i32
    %361 = arith.index_cast %360 : i32 to index
    %362 = memref.load %arg6[%361] : memref<24xi32, #tpu.memory_space<smem>>
    %363 = vector.broadcast %358 : i32 to vector<16x1xi32>
    %364 = arith.cmpi sge, %3, %363 : vector<16x1xi32>
    %365 = vector.broadcast %362 : i32 to vector<16x1xi32>
    %366 = arith.cmpi slt, %3, %365 : vector<16x1xi32>
    %367 = arith.andi %364, %366 : vector<16x1xi1>
    %cst_137 = arith.constant 0xFF800000 : f32
    %368 = vector.shape_cast %367 : vector<16x1xi1> to vector<16x1xi1>
    %369 = vector.broadcast %368 : vector<16x1xi1> to vector<16x4xi1>
    %370 = vector.broadcast %cst_137 : f32 to vector<16x4xf32>
    %371 = arith.select %369, %273, %370 : vector<16x4xi1>, vector<16x4xf32>
    %cst_138 = arith.constant dense<0xFF800000> : vector<4xf32>
    %372 = vector.multi_reduction <maximumf>, %371, %cst_138 [0] : vector<16x4xf32> to vector<4xf32>
    %373 = vector.shape_cast %372 : vector<4xf32> to vector<1x4xf32>
    %374 = arith.cmpi sle, %263, %259 : i32
    %375 = arith.cmpi sle, %362, %358 : i32
    %376 = arith.ori %374, %375 : i1
    %cst_139 = arith.constant 0.000000e+00 : f32
    %377 = vector.broadcast %cst_139 : f32 to vector<1x4xf32>
    %378 = arith.select %376, %377, %373 : vector<1x4xf32>
    %c0_140 = arith.constant 0 : index
    %c2_141 = arith.constant 2 : index
    %c3_142 = arith.constant 3 : index
    %c0_143 = arith.constant 0 : index
    %379 = vector.load %arg8[%c0_140, %c2_141, %c3_142, %c0_143] : memref<1x4x4x4xf32, #tpu.memory_space<vmem>>, vector<1x1x1x4xf32>
    %380 = vector.shape_cast %379 : vector<1x1x1x4xf32> to vector<1x4xf32>
    %381 = vector.shape_cast %378 : vector<1x4xf32> to vector<1x1x1x4xf32>
    tpu.vector_store %arg8[%c0_140, %c2_141, %c3_142, %c0_143], %381 {strides = array<i32>} : memref<1x4x4x4xf32, #tpu.memory_space<vmem>>, vector<1x1x1x4xf32>,
    %c4_i32_144 = arith.constant 4 : i32
    %382 = arith.muli %arg1, %c4_i32_144 : i32
    %c3_i32_145 = arith.constant 3 : i32
    %383 = arith.addi %382, %c3_i32_145 : i32
    %384 = arith.index_cast %383 : i32 to index
    %385 = memref.load %arg3[%384] : memref<24xi32, #tpu.memory_space<smem>>
    %c4_i32_146 = arith.constant 4 : i32
    %386 = arith.muli %arg1, %c4_i32_146 : i32
    %c3_i32_147 = arith.constant 3 : i32
    %387 = arith.addi %386, %c3_i32_147 : i32
    %388 = arith.index_cast %387 : i32 to index
    %389 = memref.load %arg4[%388] : memref<24xi32, #tpu.memory_space<smem>>
    %390 = vector.broadcast %385 : i32 to vector<16x16x1xi32>
    %391 = arith.cmpi sge, %2, %390 : vector<16x16x1xi32>
    %392 = vector.broadcast %389 : i32 to vector<16x16x1xi32>
    %393 = arith.cmpi slt, %2, %392 : vector<16x16x1xi32>
    %394 = arith.andi %391, %393 : vector<16x16x1xi1>
    %cst_148 = arith.constant 0xFF800000 : f32
    %395 = vector.shape_cast %394 : vector<16x16x1xi1> to vector<16x16x1xi1>
    %396 = vector.broadcast %395 : vector<16x16x1xi1> to vector<16x16x4xi1>
    %397 = vector.broadcast %cst_148 : f32 to vector<16x16x4xf32>
    %398 = arith.select %396, %1, %397 : vector<16x16x4xi1>, vector<16x16x4xf32>
    %cst_149 = arith.constant dense<0xFF800000> : vector<16x4xf32>
    %399 = vector.multi_reduction <maximumf>, %398, %cst_149 [0] : vector<16x16x4xf32> to vector<16x4xf32>
    %c4_i32_150 = arith.constant 4 : i32
    %400 = arith.muli %arg1, %c4_i32_150 : i32
    %c0_i32_151 = arith.constant 0 : i32
    %401 = arith.addi %400, %c0_i32_151 : i32
    %402 = arith.index_cast %401 : i32 to index
    %403 = memref.load %arg5[%402] : memref<24xi32, #tpu.memory_space<smem>>
    %c4_i32_152 = arith.constant 4 : i32
    %404 = arith.muli %arg1, %c4_i32_152 : i32
    %c0_i32_153 = arith.constant 0 : i32
    %405 = arith.addi %404, %c0_i32_153 : i32
    %406 = arith.index_cast %405 : i32 to index
    %407 = memref.load %arg6[%406] : memref<24xi32, #tpu.memory_space<smem>>
    %408 = vector.broadcast %403 : i32 to vector<16x1xi32>
    %409 = arith.cmpi sge, %3, %408 : vector<16x1xi32>
    %410 = vector.broadcast %407 : i32 to vector<16x1xi32>
    %411 = arith.cmpi slt, %3, %410 : vector<16x1xi32>
    %412 = arith.andi %409, %411 : vector<16x1xi1>
    %cst_154 = arith.constant 0xFF800000 : f32
    %413 = vector.shape_cast %412 : vector<16x1xi1> to vector<16x1xi1>
    %414 = vector.broadcast %413 : vector<16x1xi1> to vector<16x4xi1>
    %415 = vector.broadcast %cst_154 : f32 to vector<16x4xf32>
    %416 = arith.select %414, %399, %415 : vector<16x4xi1>, vector<16x4xf32>
    %cst_155 = arith.constant dense<0xFF800000> : vector<4xf32>
    %417 = vector.multi_reduction <maximumf>, %416, %cst_155 [0] : vector<16x4xf32> to vector<4xf32>
    %418 = vector.shape_cast %417 : vector<4xf32> to vector<1x4xf32>
    %419 = arith.cmpi sle, %389, %385 : i32
    %420 = arith.cmpi sle, %407, %403 : i32
    %421 = arith.ori %419, %420 : i1
    %cst_156 = arith.constant 0.000000e+00 : f32
    %422 = vector.broadcast %cst_156 : f32 to vector<1x4xf32>
    %423 = arith.select %421, %422, %418 : vector<1x4xf32>
    %c0_157 = arith.constant 0 : index
    %c3_158 = arith.constant 3 : index
    %c0_159 = arith.constant 0 : index
    %c0_160 = arith.constant 0 : index
    %424 = vector.load %arg8[%c0_157, %c3_158, %c0_159, %c0_160] : memref<1x4x4x4xf32, #tpu.memory_space<vmem>>, vector<1x1x1x4xf32>
    %425 = vector.shape_cast %424 : vector<1x1x1x4xf32> to vector<1x4xf32>
    %426 = vector.shape_cast %423 : vector<1x4xf32> to vector<1x1x1x4xf32>
    tpu.vector_store %arg8[%c0_157, %c3_158, %c0_159, %c0_160], %426 {strides = array<i32>} : memref<1x4x4x4xf32, #tpu.memory_space<vmem>>, vector<1x1x1x4xf32>,
    %c4_i32_161 = arith.constant 4 : i32
    %427 = arith.muli %arg1, %c4_i32_161 : i32
    %c1_i32_162 = arith.constant 1 : i32
    %428 = arith.addi %427, %c1_i32_162 : i32
    %429 = arith.index_cast %428 : i32 to index
    %430 = memref.load %arg5[%429] : memref<24xi32, #tpu.memory_space<smem>>
    %c4_i32_163 = arith.constant 4 : i32
    %431 = arith.muli %arg1, %c4_i32_163 : i32
    %c1_i32_164 = arith.constant 1 : i32
    %432 = arith.addi %431, %c1_i32_164 : i32
    %433 = arith.index_cast %432 : i32 to index
    %434 = memref.load %arg6[%433] : memref<24xi32, #tpu.memory_space<smem>>
    %435 = vector.broadcast %430 : i32 to vector<16x1xi32>
    %436 = arith.cmpi sge, %3, %435 : vector<16x1xi32>
    %437 = vector.broadcast %434 : i32 to vector<16x1xi32>
    %438 = arith.cmpi slt, %3, %437 : vector<16x1xi32>
    %439 = arith.andi %436, %438 : vector<16x1xi1>
    %cst_165 = arith.constant 0xFF800000 : f32
    %440 = vector.shape_cast %439 : vector<16x1xi1> to vector<16x1xi1>
    %441 = vector.broadcast %440 : vector<16x1xi1> to vector<16x4xi1>
    %442 = vector.broadcast %cst_165 : f32 to vector<16x4xf32>
    %443 = arith.select %441, %399, %442 : vector<16x4xi1>, vector<16x4xf32>
    %cst_166 = arith.constant dense<0xFF800000> : vector<4xf32>
    %444 = vector.multi_reduction <maximumf>, %443, %cst_166 [0] : vector<16x4xf32> to vector<4xf32>
    %445 = vector.shape_cast %444 : vector<4xf32> to vector<1x4xf32>
    %446 = arith.cmpi sle, %389, %385 : i32
    %447 = arith.cmpi sle, %434, %430 : i32
    %448 = arith.ori %446, %447 : i1
    %cst_167 = arith.constant 0.000000e+00 : f32
    %449 = vector.broadcast %cst_167 : f32 to vector<1x4xf32>
    %450 = arith.select %448, %449, %445 : vector<1x4xf32>
    %c0_168 = arith.constant 0 : index
    %c3_169 = arith.constant 3 : index
    %c1_170 = arith.constant 1 : index
    %c0_171 = arith.constant 0 : index
    %451 = vector.load %arg8[%c0_168, %c3_169, %c1_170, %c0_171] : memref<1x4x4x4xf32, #tpu.memory_space<vmem>>, vector<1x1x1x4xf32>
    %452 = vector.shape_cast %451 : vector<1x1x1x4xf32> to vector<1x4xf32>
    %453 = vector.shape_cast %450 : vector<1x4xf32> to vector<1x1x1x4xf32>
    tpu.vector_store %arg8[%c0_168, %c3_169, %c1_170, %c0_171], %453 {strides = array<i32>} : memref<1x4x4x4xf32, #tpu.memory_space<vmem>>, vector<1x1x1x4xf32>,
    %c4_i32_172 = arith.constant 4 : i32
    %454 = arith.muli %arg1, %c4_i32_172 : i32
    %c2_i32_173 = arith.constant 2 : i32
    %455 = arith.addi %454, %c2_i32_173 : i32
    %456 = arith.index_cast %455 : i32 to index
    %457 = memref.load %arg5[%456] : memref<24xi32, #tpu.memory_space<smem>>
    %c4_i32_174 = arith.constant 4 : i32
    %458 = arith.muli %arg1, %c4_i32_174 : i32
    %c2_i32_175 = arith.constant 2 : i32
    %459 = arith.addi %458, %c2_i32_175 : i32
    %460 = arith.index_cast %459 : i32 to index
    %461 = memref.load %arg6[%460] : memref<24xi32, #tpu.memory_space<smem>>
    %462 = vector.broadcast %457 : i32 to vector<16x1xi32>
    %463 = arith.cmpi sge, %3, %462 : vector<16x1xi32>
    %464 = vector.broadcast %461 : i32 to vector<16x1xi32>
    %465 = arith.cmpi slt, %3, %464 : vector<16x1xi32>
    %466 = arith.andi %463, %465 : vector<16x1xi1>
    %cst_176 = arith.constant 0xFF800000 : f32
    %467 = vector.shape_cast %466 : vector<16x1xi1> to vector<16x1xi1>
    %468 = vector.broadcast %467 : vector<16x1xi1> to vector<16x4xi1>
    %469 = vector.broadcast %cst_176 : f32 to vector<16x4xf32>
    %470 = arith.select %468, %399, %469 : vector<16x4xi1>, vector<16x4xf32>
    %cst_177 = arith.constant dense<0xFF800000> : vector<4xf32>
    %471 = vector.multi_reduction <maximumf>, %470, %cst_177 [0] : vector<16x4xf32> to vector<4xf32>
    %472 = vector.shape_cast %471 : vector<4xf32> to vector<1x4xf32>
    %473 = arith.cmpi sle, %389, %385 : i32
    %474 = arith.cmpi sle, %461, %457 : i32
    %475 = arith.ori %473, %474 : i1
    %cst_178 = arith.constant 0.000000e+00 : f32
    %476 = vector.broadcast %cst_178 : f32 to vector<1x4xf32>
    %477 = arith.select %475, %476, %472 : vector<1x4xf32>
    %c0_179 = arith.constant 0 : index
    %c3_180 = arith.constant 3 : index
    %c2_181 = arith.constant 2 : index
    %c0_182 = arith.constant 0 : index
    %478 = vector.load %arg8[%c0_179, %c3_180, %c2_181, %c0_182] : memref<1x4x4x4xf32, #tpu.memory_space<vmem>>, vector<1x1x1x4xf32>
    %479 = vector.shape_cast %478 : vector<1x1x1x4xf32> to vector<1x4xf32>
    %480 = vector.shape_cast %477 : vector<1x4xf32> to vector<1x1x1x4xf32>
    tpu.vector_store %arg8[%c0_179, %c3_180, %c2_181, %c0_182], %480 {strides = array<i32>} : memref<1x4x4x4xf32, #tpu.memory_space<vmem>>, vector<1x1x1x4xf32>,
    %c4_i32_183 = arith.constant 4 : i32
    %481 = arith.muli %arg1, %c4_i32_183 : i32
    %c3_i32_184 = arith.constant 3 : i32
    %482 = arith.addi %481, %c3_i32_184 : i32
    %483 = arith.index_cast %482 : i32 to index
    %484 = memref.load %arg5[%483] : memref<24xi32, #tpu.memory_space<smem>>
    %c4_i32_185 = arith.constant 4 : i32
    %485 = arith.muli %arg1, %c4_i32_185 : i32
    %c3_i32_186 = arith.constant 3 : i32
    %486 = arith.addi %485, %c3_i32_186 : i32
    %487 = arith.index_cast %486 : i32 to index
    %488 = memref.load %arg6[%487] : memref<24xi32, #tpu.memory_space<smem>>
    %489 = vector.broadcast %484 : i32 to vector<16x1xi32>
    %490 = arith.cmpi sge, %3, %489 : vector<16x1xi32>
    %491 = vector.broadcast %488 : i32 to vector<16x1xi32>
    %492 = arith.cmpi slt, %3, %491 : vector<16x1xi32>
    %493 = arith.andi %490, %492 : vector<16x1xi1>
    %cst_187 = arith.constant 0xFF800000 : f32
    %494 = vector.shape_cast %493 : vector<16x1xi1> to vector<16x1xi1>
    %495 = vector.broadcast %494 : vector<16x1xi1> to vector<16x4xi1>
    %496 = vector.broadcast %cst_187 : f32 to vector<16x4xf32>
    %497 = arith.select %495, %399, %496 : vector<16x4xi1>, vector<16x4xf32>
    %cst_188 = arith.constant dense<0xFF800000> : vector<4xf32>
    %498 = vector.multi_reduction <maximumf>, %497, %cst_188 [0] : vector<16x4xf32> to vector<4xf32>
    %499 = vector.shape_cast %498 : vector<4xf32> to vector<1x4xf32>
    %500 = arith.cmpi sle, %389, %385 : i32
    %501 = arith.cmpi sle, %488, %484 : i32
    %502 = arith.ori %500, %501 : i1
    %cst_189 = arith.constant 0.000000e+00 : f32
    %503 = vector.broadcast %cst_189 : f32 to vector<1x4xf32>
    %504 = arith.select %502, %503, %499 : vector<1x4xf32>
    %c0_190 = arith.constant 0 : index
    %c3_191 = arith.constant 3 : index
    %c3_192 = arith.constant 3 : index
    %c0_193 = arith.constant 0 : index
    %505 = vector.load %arg8[%c0_190, %c3_191, %c3_192, %c0_193] : memref<1x4x4x4xf32, #tpu.memory_space<vmem>>, vector<1x1x1x4xf32>
    %506 = vector.shape_cast %505 : vector<1x1x1x4xf32> to vector<1x4xf32>
    %507 = vector.shape_cast %504 : vector<1x4xf32> to vector<1x1x1x4xf32>
    tpu.vector_store %arg8[%c0_190, %c3_191, %c3_192, %c0_193], %507 {strides = array<i32>} : memref<1x4x4x4xf32, #tpu.memory_space<vmem>>, vector<1x1x1x4xf32>,
    return
  }
  func.func @transform_0(%arg0: i32, %arg1: i32, %arg2: memref<6xi32, #tpu.memory_space<smem>>, %arg3: memref<24xi32, #tpu.memory_space<smem>>, %arg4: memref<24xi32, #tpu.memory_space<smem>>, %arg5: memref<24xi32, #tpu.memory_space<smem>>, %arg6: memref<24xi32, #tpu.memory_space<smem>>) -> (i32, i32, i32, i32) {
    %0 = arith.index_cast %arg1 : i32 to index
    %1 = memref.load %arg2[%0] : memref<6xi32, #tpu.memory_space<smem>>
    %c0_i32 = arith.constant 0 : i32
    %c0_i32_0 = arith.constant 0 : i32
    %c0_i32_1 = arith.constant 0 : i32
    return %1, %c0_i32, %c0_i32_0, %arg0 : i32, i32, i32, i32
  }
  func.func @transform_1(%arg0: i32, %arg1: i32, %arg2: memref<6xi32, #tpu.memory_space<smem>>, %arg3: memref<24xi32, #tpu.memory_space<smem>>, %arg4: memref<24xi32, #tpu.memory_space<smem>>, %arg5: memref<24xi32, #tpu.memory_space<smem>>, %arg6: memref<24xi32, #tpu.memory_space<smem>>) -> (i32, i32, i32, i32) {
    %c0_i32 = arith.constant 0 : i32
    %c0_i32_0 = arith.constant 0 : i32
    %c0_i32_1 = arith.constant 0 : i32
    return %arg1, %c0_i32, %c0_i32_0, %arg0 : i32, i32, i32, i32
  }
}

</mosaic_0001>

<bundles_post_ra>
// kernel: tpu_custom_call.1
= control target key start
LH: loop header
LB: loop body
LE: loop exit
PB: predicated region body
PF: predicated region fallthrough
CT: control target
= control target key end

     0   :  { %s4206_s0 = inlined_call_operand.vmem [shape: s32[6], index: 0, kind: input, shape index: {}]   ;;  %s4207_s5 = inlined_call_operand.vmem [shape: f32[2,16,16,4], index: 5, kind: input, shape index: {}]   ;;  %s4208_s6 = inlined_call_operand.vmem [shape: f32[6,4,4,4], index: 6, kind: output, shape index: {}]   ;;  %s4209_s1 = inlined_call_operand.vmem [shape: s32[24], index: 1, kind: input, shape index: {}]   ;;  %s4210_s2 = inlined_call_operand.vmem [shape: s32[24], index: 2, kind: input, shape index: {}]   ;;  %s4211_s3 = inlined_call_operand.vmem [shape: s32[24], index: 3, kind: input, shape index: {}]   ;;  %s4212_s4 = inlined_call_operand.vmem [shape: s32[24], index: 4, kind: input, shape index: {}]  }
   0x1   :  { %4232 = sst [smem:[#allocation15_spill]] %s4207_s5  ;;  %s11_s23 = sshll.u32 %s4206_s0, 4  ;;  %s12_s23 = int_to_ptr.vmem [resolvable:$true] %s11_s23 }
   0x2   :  { %4233 = sst [smem:[#allocation16_spill]] %s4208_s6  ;;  %s15_s26 = sshll.u32 %s4209_s1, 4  ;;  %s16_s26 = int_to_ptr.vmem [resolvable:$true] %s15_s26 }
   0x3   :  { %s1624_s27 = scalar_lea.vmem %s12_s23, 16  ;;  %p1629_p1 = scmp.lt.s32.totalorder %s12_s23, %s12_s23 }
   0x4   :  { %p1625_p0 = scmp.ne.s32.totalorder %s12_s23, %s1624_s27  ;;  %p1630_p2 = scmp.lt.s32.totalorder %s1624_s27, %s1624_s27 }
   0x6   :  { %p1631_p3 = por %p1630_p2, %p1629_p1 }
   0x8   :  { %p1632_p4 = pnand %p1631_p3, %p1625_p0 }
   0xa   :  { %1635 = shalt.err (!%p1632_p4)  }
   0xb   :  { %s1710_s28 = smov [#allocation3]   ;;  %s1636_s29 = scalar_lea.vmem %s16_s26, 16 }
   0xc   :  { %14 = dma.vmem_to_smem %s12_s23, 16, %s1710_s28, [#allocation2] }
   0xd   :  { %p1637_p5 = scmp.ne.s32.totalorder %s16_s26, %s1636_s29  ;;  %p1641_p6 = scmp.lt.s32.totalorder %s16_s26, %s16_s26 }
   0xe   :  { %p1642_p7 = scmp.lt.s32.totalorder %s1636_s29, %s1636_s29 }
  0x10   :  { %p1643_p8 = por %p1642_p7, %p1641_p6 }
  0x12   :  { %p1644_p9 = pnand %p1643_p8, %p1637_p5 }
  0x14   :  { %1647 = shalt.err (!%p1644_p9)  }
  0x15   :  { %s1711_s0 = smov [#allocation4]   ;;  %s19_s7 = sshll.u32 %s4210_s2, 4  ;;  %s20_s7 = int_to_ptr.vmem [resolvable:$true] %s19_s7 }
  0x16   :  { %18 = dma.vmem_to_smem %s16_s26, 16, %s1711_s0, [#allocation2] }
  0x17   :  { %s23_s10 = sshll.u32 %s4211_s3, 4  ;;  %s1648_s11 = scalar_lea.vmem %s20_s7, 16  ;;  %s24_s10 = int_to_ptr.vmem [resolvable:$true] %s23_s10 }
  0x18   :  { %p1649_p10 = scmp.ne.s32.totalorder %s20_s7, %s1648_s11  ;;  %p1653_p11 = scmp.lt.s32.totalorder %s20_s7, %s20_s7 }
  0x19   :  { %p1654_p12 = scmp.lt.s32.totalorder %s1648_s11, %s1648_s11 }
  0x1b   :  { %p1655_p13 = por %p1654_p12, %p1653_p11 }
  0x1d   :  { %p1656_p0 = pnand %p1655_p13, %p1649_p10 }
  0x1f   :  { %1659 = shalt.err (!%p1656_p0)  }
  0x20   :  { %s1712_s12 = smov [#allocation5]   ;;  %s1660_s13 = scalar_lea.vmem %s24_s10, 16 }
  0x21   :  { %22 = dma.vmem_to_smem %s20_s7, 16, %s1712_s12, [#allocation2] }
  0x22   :  { %p1661_p1 = scmp.ne.s32.totalorder %s24_s10, %s1660_s13  ;;  %p1665_p2 = scmp.lt.s32.totalorder %s24_s10, %s24_s10 }
  0x23   :  { %p1666_p3 = scmp.lt.s32.totalorder %s1660_s13, %s1660_s13 }
  0x25   :  { %p1667_p4 = por %p1666_p3, %p1665_p2 }
  0x27   :  { %p1668_p5 = pnand %p1667_p4, %p1661_p1 }
  0x29   :  { %1671 = shalt.err (!%p1668_p5)  }
  0x2a   :  { %s1713_s2 = smov [#allocation6]   ;;  %s27_s15 = sshll.u32 %s4212_s4, 4  ;;  %s28_s15 = int_to_ptr.vmem [resolvable:$true] %s27_s15 }
  0x2b   :  { %26 = dma.vmem_to_smem %s24_s10, 16, %s1713_s2, [#allocation2] }
  0x2c   :  { %s1672_s16 = scalar_lea.vmem %s28_s15, 16  ;;  %p1677_p7 = scmp.lt.s32.totalorder %s28_s15, %s28_s15 }
  0x2d   :  { %p1673_p6 = scmp.ne.s32.totalorder %s28_s15, %s1672_s16  ;;  %p1678_p8 = scmp.lt.s32.totalorder %s1672_s16, %s1672_s16 }
  0x2f   :  { %p1679_p9 = por %p1678_p8, %p1677_p7 }
  0x31   :  { %p1680_p10 = pnand %p1679_p9, %p1673_p6 }
  0x33   :  { %1683 = shalt.err (!%p1680_p10)  }
  0x34   :  { %s1714_s17 = smov [#allocation7]  }
  0x35   :  { %30 = dma.vmem_to_smem %s28_s15, 16, %s1714_s17, [#allocation2] }
  0x36   :  { %1696 = dma.done.wait [#allocation2], 80 }
  0x37   :  { %1697 = vsyncadd [#allocation2], 4294967216 }
  0x38   :  { %32 = sfence }
  0x39   :  { %s1765_s18 = smov 0   ;;  %s1767_s19 = smov 0  }
  0x3a   :  { %s1769_s20 = smov 0  }
  0x3b LB: > { %4234 = sst [smem:[#allocation9_spill]] %s1704_s19  ;;  %s47_s4 = sadd.s32 1, %s1704_s19  ;;  %s1708_s20 = sphi %s1769_s20, %s38_s20   ;;  %s1704_s19 = sphi %s1767_s19, %s4718_s19   ;;  %s1700_s18 = sphi %s1765_s18, %s4717_s18  }
  0x3c   : > { %4235 = sst [smem:[#allocation10_spill]] %s1708_s20  ;;  %p1541_p11 = scmp.ge.s32.totalorder %s1708_s20, 1 }
  0x3d   : > { %p48_p12 = scmp.ge.s32.totalorder %s47_s4, 6  ;;  %p137_p13 = scmp.lt.s32.totalorder %s1708_s20, 7 }
  0x3f   : > { %s4720_s4 = smov (%p48_p12, %s47_s4), 0  ;;  %p138_p0 = pnand %p1541_p11, %p137_p13 }
  0x40   : > { %4236 = sst [smem:[#allocation11_spill]] %s4720_s4 }
  0x41   : > { %141 = sbr.rel (%p138_p0) target bundleno = 351 (0x15f), region = 24 }
  0x48   : > { %s164_s21 = sld [smem:[#allocation3 + %s1700_s18]]  ;;  %s1787_s22 = sshll.u32 %s1700_s18, 2  ;;  %v214_v0 = vlaneseq  ;;  %vm4216_vm2 = vcmask 31744  }
  0x49   : > { %s1790_s23 = sld [smem:[#allocation4 + %s1787_s22]]  ;;  %s1807_s28 = sadd.s32 1, %s1787_s22 }
  0x4a   : > { %s1793_s24 = sld [smem:[#allocation5 + %s1787_s22]]  ;;  %v1798_v1 = vshrl.u32 %v214_v0, 7  ;;  %s1829_s8 = sadd.s32 2, %s1787_s22 }
  0x4b   : > { %s1796_s25 = sld [smem:[#allocation6 + %s1787_s22]]  ;;  %s2176_s12 = sadd.s32 3, %s1787_s22 }
  0x4c   : > { %s1801_s26 = sld [smem:[#allocation7 + %s1787_s22]]  ;;  %v1824_v4 = vadd.s32 8, %v1798_v1 }
  0x4d   : > { %s1810_s29 = sld [smem:[#allocation6 + %s1807_s28]] }
  0x4e   : > { %p165_p1 = scmp.lt.s32.totalorder %s164_s21, 1  ;;  %s1816_s0 = sld [smem:[#allocation7 + %s1807_s28]] }
  0x4f   : > { %v1804_v2 = vstv %s1790_s23  ;;  %s4237_s5 = sld [smem:[#allocation15_spill]]  ;;  %s4348_s6 = sld [smem:[#allocation16_spill]] }
  0x50   : > { %s4722_s21 = smov (!%p165_p1, %s164_s21), 1  ;;  %v1813_v3 = vstv %s1793_s24  ;;  %vm221_vm0 = vcmp.le.s32.totalorder %v1804_v2, 0  ;;  %vm222_vm1 = vcmp.le.s32.totalorder %v1804_v2, 1  ;;  %vm223_vm3 = vcmp.le.s32.totalorder %v1804_v2, 2  ;;  %s1836_s9 = sld [smem:[#allocation6 + %s1829_s8]] }
  0x51   : > { %s1561_s27 = sshll.u32 %s4722_s21, 8  ;;  %vm238_vm10 = vcmp.gt.s32.totalorder %v1813_v3, 0  ;;  %vm239_vm12 = vcmp.gt.s32.totalorder %v1813_v3, 1  ;;  %vm240_vm13 = vcmp.gt.s32.totalorder %v1813_v3, 2  ;;  %vm241_vm14 = vcmp.gt.s32.totalorder %v1813_v3, 3  ;;  %p422_p2 = scmp.le.s32.totalorder %s1793_s24, %s1790_s23 }
  0x52   : > { %v399_v6 = vstv %s1796_s25  ;;  %vm242_vm9 = vcmp.gt.s32.totalorder %v1813_v3, 4  ;;  %vm243_vm8 = vcmp.gt.s32.totalorder %v1813_v3, 5  ;;  %v402_v9 = vstv %s1801_s26  ;;  %vm1873_vm11 = vmand %vm221_vm0, %vm238_vm10  ;;  %p423_p3 = scmp.le.s32.totalorder %s1801_s26, %s1796_s25  ;;  %s2128_s10 = sld [smem:[#allocation7 + %s1829_s8]] }
  0x53   : > { %vm245_vm6 = vcmp.gt.s32.totalorder %v1813_v3, 7  ;;  %vm246_vm5 = vcmp.gt.s32.totalorder %v1813_v3, 8  ;;  %vm249_vm4 = vcmp.gt.s32.totalorder %v1813_v3, 11  ;;  %vm250_vm15 = vcmp.gt.s32.totalorder %v1813_v3, 12  ;;  %vm1890_vm0 = vmand %vm222_vm1, %vm239_vm12  ;;  %s2197_s13 = sld [smem:[#allocation6 + %s2176_s12]] }
  0x54   : > { %v434_v16 = vstv %s1810_s29  ;;  %vm234_vm10 = vcmp.le.s32.totalorder %v1804_v2, 13  ;;  %vm251_vm7 = vcmp.gt.s32.totalorder %v1813_v3, 13  ;;  %vm1907_vm1 = vmand %vm223_vm3, %vm240_vm13  ;;  %v4214_v27 = vstv %s1816_s0  ;;  %p457_p4 = scmp.le.s32.totalorder %s1816_s0, %s1810_s29  ;;  %p2157_p5 = por %p423_p3, %p422_p2 }
  0x55   : > { %s1821_s7 = scalar_lea.vmem %s4237_s5, %s1561_s27  ;;  %s2200_s2 = sld [smem:[#allocation7 + %s2176_s12]] }
  0x56   : > { %v1843_v5 = vld [vmem:[%s1821_s7] sm:$0xff]  ;;  %v1851_v7 = vld [vmem:[%s1821_s7 + $0x8] sm:$0xff]  ;;  %v1854_v8 = vld [vmem:[%s1821_s7 + $0x10] sm:$0xff]  ;;  %p2223_p6 = por %p457_p4, %p422_p2  ;;  %s2328_s16 = sld [smem:[#allocation4 + %s1829_s8]] }
  0x57   : > { %v1862_v10 = vld [vmem:[%s1821_s7 + $0x20] sm:$0xff]  ;;  %v1878_v12 = vld [vmem:[%s1821_s7 + $0x18] sm:$0xff]  ;;  %v1881_v13 = vld [vmem:[%s1821_s7 + $0x30] sm:$0xff]  ;;  %v302_v15 = vsel %vm1873_vm11, %v1843_v5, -inf  ;;  %v303_v19 = vsel %vm1873_vm11, %v1851_v7, -inf  ;;  %v304_v20 = vsel %vm1890_vm0, %v1854_v8, -inf }
  0x58   : > { %v1899_v17 = vld [vmem:[%s1821_s7 + $0x40] sm:$0xff]  ;;  %v335_v21 = vsel %vm4216_vm2, %v302_v15, -inf  ;;  %v1919_v22 = vld [vmem:[%s1821_s7 + $0x28] sm:$0xff]  ;;  %v1922_v23 = vld [vmem:[%s1821_s7 + $0x50] sm:$0xff]  ;;  %vm4244_vm11 = vcmp.le.s32.totalorder %v1804_v2, 3  ;;  %v306_v25 = vsel %vm1907_vm1, %v1862_v10, -inf  ;;  %p490_p7 = scmp.le.s32.totalorder %s2128_s10, %s1836_s9 }
  0x59   : > { %vm1930_vm13 = vmand %vm4244_vm11, %vm241_vm14  ;;  %v336_v26 = vsel %vm4216_vm2, %v304_v20, -inf  ;;  %v1940_v28 = vld [vmem:[%s1821_s7 + $0x60] sm:$0xff]  ;;  %vm4247_vm14 = vcmp.le.s32.totalorder %v1804_v2, 4  ;;  %v305_v30 = vsel %vm1890_vm0, %v1878_v12, -inf  ;;  %v337_v32 = vsel %vm4216_vm2, %v306_v25, -inf  ;;  %v1961_v34 = vld [vmem:[%s1821_s7 + $0x38] sm:$0xff] }
  0x5a   : > { %vm1948_vm11 = vmand %vm4247_vm14, %vm242_vm9  ;;  %v308_v31 = vsel %vm1930_vm13, %v1881_v13, -inf  ;;  %v1964_v35 = vld [vmem:[%s1821_s7 + $0x70] sm:$0xff]  ;;  %vm4250_vm9 = vcmp.le.s32.totalorder %v1804_v2, 5  ;;  %v338_v38 = vmax.f32 %v335_v21, %v337_v32  ;;  %v1979_v40 = vsel %vm4216_vm2, %v303_v19, -inf  ;;  %v1982_v41 = vld [vmem:[%s1821_s7 + $0x48] sm:$0xff]  ;;  %s2331_s17 = sld [smem:[#allocation5 + %s1829_s8]]  ;;  %p2343_p9 = por %p490_p7, %p422_p2 }
  0x5b   : > { %vm1970_vm14 = vmand %vm4250_vm9, %vm243_vm8  ;;  %v310_v37 = vsel %vm1948_vm11, %v1899_v17, -inf  ;;  %v339_v39 = vsel %vm4216_vm2, %v308_v31, -inf  ;;  %v1985_v42 = vld [vmem:[%s1821_s7 + $0x80] sm:$0xff]  ;;  %vm4253_vm8 = vcmp.gt.s32.totalorder %v1813_v3, 6  ;;  %vm4254_vm0 = vcmp.le.s32.totalorder %v1804_v2, 6  ;;  %v2003_v48 = vld [vmem:[%s1821_s7 + $0x58] sm:$0xff]  ;;  %p523_p8 = scmp.le.s32.totalorder %s2200_s2, %s2197_s13 }
  0x5c   : > { %vm1991_vm9 = vmand %vm4254_vm0, %vm4253_vm8  ;;  %v307_v44 = vsel %vm1907_vm1, %v1919_v22, -inf  ;;  %v312_v45 = vsel %vm1970_vm14, %v1922_v23, -inf  ;;  %v340_v46 = vmax.f32 %v336_v26, %v339_v39  ;;  %v341_v47 = vsel %vm4216_vm2, %v310_v37, -inf  ;;  %v2006_v49 = vld [vmem:[%s1821_s7 + $0x90] sm:$0xff]  ;;  %v2024_v55 = vld [vmem:[%s1821_s7 + $0x68] sm:$0xff]  ;;  %s2348_s25 = sld [smem:[#allocation4 + %s1807_s28]] }
  0x5d   : > { %vm4257_vm1 = vcmp.le.s32.totalorder %v1804_v2, 7  ;;  %v314_v51 = vsel %vm1991_vm9, %v1940_v28, -inf  ;;  %v342_v52 = vmax.f32 %v338_v38, %v341_v47  ;;  %v343_v53 = vsel %vm4216_vm2, %v312_v45, -inf  ;;  %v2027_v56 = vld [vmem:[%s1821_s7 + $0xa0] sm:$0xff]  ;;  %v2049_v62 = vld [vmem:[%s1821_s7 + $0x78] sm:$0xff]  ;;  %v2052_v63 = vld [vmem:[%s1821_s7 + $0xb0] sm:$0xff]  ;;  %p2390_p10 = por %p523_p8, %p422_p2 }
  0x5e   : > { %vm2012_vm8 = vmand %vm4257_vm1, %vm245_vm6  ;;  %v2021_v54 = vsel %vm4216_vm2, %v305_v30, -inf  ;;  %vm4260_vm6 = vcmp.le.s32.totalorder %v1804_v2, 8  ;;  %v309_v58 = vsel %vm1930_vm13, %v1961_v34, -inf  ;;  %v344_v60 = vmax.f32 %v340_v46, %v343_v53  ;;  %v2070_v19 = vld [vmem:[%s1821_s7 + $0x88] sm:$0xff]  ;;  %v2073_v20 = vld [vmem:[%s1821_s7 + $0xc0] sm:$0xff]  ;;  %s2366_s26 = sld [smem:[#allocation6 + %s1807_s28]] }
  0x5f   : > { %vm2033_vm0 = vmand %vm4260_vm6, %vm246_vm5  ;;  %v316_v59 = vsel %vm2012_vm8, %v1964_v35, -inf  ;;  %v345_v61 = vsel %vm4216_vm2, %v314_v51, -inf  ;;  %vm4263_vm5 = vcmp.gt.s32.totalorder %v1813_v3, 9  ;;  %vm4264_vm1 = vcmp.le.s32.totalorder %v1804_v2, 9  ;;  %v2093_v32 = vld [vmem:[%s1821_s7 + $0x98] sm:$0xff]  ;;  %v2096_v37 = vld [vmem:[%s1821_s7 + $0xd0] sm:$0xff] }
  0x60   : > { %vm2058_vm6 = vmand %vm4264_vm1, %vm4263_vm5  ;;  %v318_v11 = vsel %vm2033_vm0, %v1985_v42, -inf  ;;  %v346_v14 = vmax.f32 %v342_v52, %v345_v61  ;;  %v347_v15 = vsel %vm4216_vm2, %v316_v59, -inf  ;;  %v2067_v18 = vsel %vm4216_vm2, %v307_v44, -inf  ;;  %v2131_v51 = vld [vmem:[%s1821_s7 + $0xa8] sm:$0xff]  ;;  %v2134_v52 = vld [vmem:[%s1821_s7 + $0xe0] sm:$0xff]  ;;  %s2369_s27 = sld [smem:[#allocation7 + %s1807_s28]]  ;;  %p1041_p11 = scmp.le.s32.totalorder %s2331_s17, %s2328_s16 }
  0x61   : > { %vm4267_vm5 = vcmp.gt.s32.totalorder %v1813_v3, 10  ;;  %vm4268_vm1 = vcmp.le.s32.totalorder %v1804_v2, 10  ;;  %v320_v26 = vsel %vm2058_vm6, %v2006_v49, -inf  ;;  %v348_v30 = vmax.f32 %v344_v60, %v347_v15  ;;  %v2179_v15 = vld [vmem:[%s1821_s7 + $0xf0] sm:$0xff]  ;;  %s425_s14 = scalar_select %p2157_p5, 1, 0 }
  0x62   : > { %vm2079_vm3 = vmand %vm4268_vm1, %vm4267_vm5  ;;  %v349_v31 = vsel %vm4216_vm2, %v318_v11, -inf  ;;  %vm4271_vm5 = vcmp.le.s32.totalorder %v1804_v2, 11  ;;  %v313_v39 = vsel %vm1970_vm14, %v2003_v48, -inf  ;;  %v351_v46 = vsel %vm4216_vm2, %v320_v26, -inf  ;;  %4286 = vst [vmem:[#allocation12_spill] sm:$0xff] %v2179_v15  ;;  %v2299_v24 = vld [vmem:[%s1821_s7 + $0xe8] sm:$0xff] }
  0x63   : > { %vm2102_vm1 = vmand %vm4271_vm5, %vm249_vm4  ;;  %v322_v44 = vsel %vm2079_vm3, %v2027_v56, -inf  ;;  %v350_v45 = vmax.f32 %v346_v14, %v349_v31  ;;  %vm2116_vm4 = vcmp.ge.s32.totalorder %v1798_v1, %v399_v6  ;;  %vm2123_vm5 = vcmp.lt.s32.totalorder %v1798_v1, %v402_v9  ;;  %s459_s15 = scalar_select %p2223_p6, 1, 0 }
  0x64   : > { %vm4278_vm14 = vcmp.le.s32.totalorder %v1804_v2, 12  ;;  %v315_v59 = vsel %vm1991_vm9, %v2024_v55, -inf  ;;  %v324_v60 = vsel %vm2102_vm1, %v2052_v63, -inf  ;;  %v352_v61 = vmax.f32 %v348_v30, %v351_v46  ;;  %s2401_s1 = sld [smem:[#allocation6 + %s2176_s12]]  ;;  %p174_p2 = scmp.lt.s32.totalorder %s1700_s18, 5 }
  0x65   : > { %vm2140_vm12 = vmand %vm4278_vm14, %vm250_vm15  ;;  %v353_v11 = vsel %vm4216_vm2, %v322_v44, -inf  ;;  %vm2164_vm15 = vcmp.ge.s32.totalorder %v1798_v1, %v434_v16  ;;  %v4282_v14 = vmov 0  ;;  %vm2171_vm9 = vcmp.lt.s32.totalorder %v1798_v1, %v4214_v27  ;;  %s2404_s23 = sld [smem:[#allocation7 + %s2176_s12]] }
  0x66   : > { %v4283_v14 = vsel %vm2164_vm15, 4294967295, %v4282_v14  ;;  %vm2185_vm14 = vmand %vm234_vm10, %vm251_vm7  ;;  %v317_v30 = vsel %vm2012_vm8, %v2049_v62, -inf  ;;  %v326_v31 = vsel %vm2140_vm12, %v2073_v20, -inf  ;;  %v354_v44 = vmax.f32 %v350_v45, %v353_v11  ;;  %s492_s24 = scalar_select %p2343_p9, 1, 0 }
  0x67   : > { %v355_v46 = vsel %vm4216_vm2, %v324_v60, -inf  ;;  %vm4289_vm7 = vcmp.gt.s32.totalorder %v1813_v3, 14  ;;  %vm4290_vm10 = vcmp.le.s32.totalorder %v1804_v2, 14  ;;  %v319_v50 = vsel %vm2033_vm0, %v2070_v19, -inf  ;;  %s525_s30 = scalar_select %p2390_p10, 1, 0 }
  0x68   : > { %vm2206_vm15 = vmand %vm4290_vm10, %vm4289_vm7  ;;  %v328_v45 = vsel %vm2185_vm14, %v2096_v37, -inf  ;;  %v356_v60 = vmax.f32 %v352_v61, %v355_v46  ;;  %v357_v11 = vsel %vm4216_vm2, %v326_v31, -inf  ;;  %vm4294_vm8 = vcmp.gt.s32.totalorder %v1813_v3, 15  ;;  %v2243_v3 = vld [vmem:[%s1821_s7 + $0xb8] sm:$0xff]  ;;  %p1075_p12 = scmp.le.s32.totalorder %s2369_s27, %s2366_s26  ;;  %s4724_s18 = smov (!%p174_p2, %s1700_s18), 5 }
  0x69   : > { %vm4295_vm0 = vcmp.le.s32.totalorder %v1804_v2, 15  ;;  %v321_v61 = vsel %vm2058_vm6, %v2093_v32, -inf  ;;  %v330_v31 = vsel %vm2206_vm15, %v2134_v52, -inf  ;;  %v358_v46 = vmax.f32 %v354_v44, %v357_v11  ;;  %v2269_v11 = vld [vmem:[%s1821_s7 + $0xc8] sm:$0xff]  ;;  %s1562_s11 = sshll.u32 %s4724_s18, 4  ;;  %s2816_s3 = sld [smem:[#allocation4 + %s2176_s12]] }
  0x6a   : > { %vm2231_vm7 = vmand %vm4295_vm0, %vm4294_vm8  ;;  %v359_v25 = vsel %vm4216_vm2, %v328_v45, -inf  ;;  %v323_v2 = vsel %vm2079_vm3, %v2131_v51, -inf  ;;  %v361_v44 = vsel %vm4216_vm2, %v330_v31, -inf  ;;  %vm2255_vm6 = vcmp.ge.s32.totalorder %v1824_v4, %v399_v6  ;;  %p2482_p13 = por %p1075_p12, %p1041_p11  ;;  %s2833_s21 = sld [smem:[#allocation7 + %s1807_s28]] }
  0x6b   : > { %v332_v0 = vsel %vm2231_vm7, %v2179_v15, -inf  ;;  %v360_v27 = vmax.f32 %v356_v60, %v359_v25  ;;  %vm2262_vm10 = vcmp.lt.s32.totalorder %v1824_v4, %v402_v9  ;;  %v2272_v25 = vld [vmem:[%s1821_s7 + $0xd8] sm:$0xff]  ;;  %v362_v60 = vmax.f32 %v358_v46, %v361_v44  ;;  %p1139_p0 = scmp.le.s32.totalorder %s2404_s23, %s2401_s1  ;;  %s2840_s29 = sld [smem:[#allocation6 + %s1829_s8]] }
  0x6c   : > { %v363_v6 = vsel %vm4216_vm2, %v332_v0, -inf  ;;  %v369_v31 = vmax.f32 %v1979_v40, %v2067_v18  ;;  %v370_v9 = vsel %vm4216_vm2, %v309_v58, -inf  ;;  %vm2285_vm3 = vcmp.ge.s32.totalorder %v1824_v4, %v434_v16  ;;  %s2870_s18 = sld [smem:[#allocation6 + %s1807_s28]] }
  0x6d   : > { %v4304_v46 = vstv %s1816_s0  ;;  %v364_v40 = vmax.f32 %v360_v27, %v363_v6  ;;  %v371_v58 = vmax.f32 %v2021_v54, %v370_v9  ;;  %v4307_v16 = vsel %vm1948_vm11, %v1982_v41, -inf  ;;  %s2395_s0 = sld [smem:[#allocation5 + %s1807_s28]]  ;;  %p2516_p1 = por %p1139_p0, %p1041_p11 }
  0x6e   : > { %vm2292_vm8 = vcmp.lt.s32.totalorder %v1824_v4, %v4304_v46  ;;  %v372_v18 = vsel %vm4216_vm2, %v4307_v16, -inf  ;;  %v374_v44 = vsel %vm4216_vm2, %v313_v39, -inf  ;;  %v2311_v46 = vld [vmem:[%s1821_s7 + $0xf8] sm:$0xff]  ;;  %v325_v27 = vsel %vm2102_vm1, %v2243_v3, -inf  ;;  %s2905_s5 = sld [smem:[#allocation7 + %s1829_s8]] }
  0x6f   : > { %v373_v29 = vmax.f32 %v369_v31, %v372_v18  ;;  %v376_v54 = vsel %vm4216_vm2, %v315_v59, -inf  ;;  %v378_v6 = vsel %vm4216_vm2, %v317_v30, -inf  ;;  %v327_v39 = vsel %vm2140_vm12, %v2269_v11, -inf  ;;  %vm405_vm12 = vmand %vm2116_vm4, %vm2123_vm5  ;;  %s2934_s19 = sld [smem:[#allocation6 + %s2176_s12]] }
  0x70   : > { %v329_v38 = vsel %vm2185_vm14, %v2272_v25, -inf  ;;  %v375_v9 = vmax.f32 %v371_v58, %v374_v44  ;;  %v380_v16 = vsel %vm4216_vm2, %v319_v50, -inf  ;;  %v331_v59 = vsel %vm2206_vm15, %v2299_v24, -inf  ;;  %vm406_vm4 = vmand %vm2255_vm6, %vm2262_vm10  ;;  %s2937_s20 = sld [smem:[#allocation7 + %s2176_s12]] }
  0x71   : > { %v365_v53 = vmax.f32 %v362_v60, %v364_v40  ;;  %v377_v30 = vmax.f32 %v373_v29, %v376_v54  ;;  %v382_v26 = vsel %vm4216_vm2, %v321_v61, -inf  ;;  %v333_v33 = vsel %vm2231_vm7, %v2311_v46, -inf }
  0x72   : > { %v379_v50 = vmax.f32 %v375_v9, %v378_v6  ;;  %v384_v60 = vsel %vm4216_vm2, %v323_v2, -inf  ;;  %v4309_v61 = vstv %s1836_s9  ;;  %v386_v2 = vsel %vm4216_vm2, %v325_v27, -inf  ;;  %s4055_s9 = sld [smem:[#allocation7 + %s2176_s12]] }
  0x73   : > { %vm2361_vm13 = vcmp.ge.s32.totalorder %v1798_v1, %v4309_v61  ;;  %v381_v57 = vmax.f32 %v377_v30, %v380_v16  ;;  %v388_v40 = vsel %vm4216_vm2, %v327_v39, -inf  ;;  %vm4312_vm11 = vnez %v4283_v14  ;;  %p733_p8 = scmp.le.s32.totalorder %s2395_s0, %s2348_s25 }
  0x74   : > { %vm440_vm1 = vmand %vm4312_vm11, %vm2171_vm9  ;;  %v4313_v58 = vmov %v4309_v61  ;;  %v383_v44 = vmax.f32 %v379_v50, %v382_v26  ;;  %v390_v27 = vsel %vm4216_vm2, %v329_v38, -inf  ;;  %v392_v29 = vsel %vm4216_vm2, %v331_v59, -inf }
  0x75   : > { %vm2380_vm15 = vcmp.ge.s32.totalorder %v1824_v4, %v4313_v58  ;;  %v470_v54 = vstv %s2128_s10  ;;  %v385_v6 = vmax.f32 %v381_v57, %v384_v60  ;;  %v394_v39 = vsel %vm4216_vm2, %v333_v33, -inf }
  0x76   : > { %v411_v9 = vsel %vm405_vm12, %v365_v53, -inf  ;;  %vm471_vm14 = vcmp.lt.s32.totalorder %v1798_v1, %v470_v54  ;;  %v387_v38 = vmax.f32 %v383_v44, %v386_v2  ;;  %v446_v16 = vsel %vm440_vm1, %v365_v53, -inf  ;;  %p831_p2 = scmp.le.s32.totalorder %s2937_s20, %s2934_s19 }
  0x77   : > { %vm473_vm0 = vmand %vm2361_vm13, %vm471_vm14  ;;  %v500_v47 = vstv %s2197_s13  ;;  %v503_v36 = vstv %s2200_s2  ;;  %v389_v59 = vmax.f32 %v385_v6, %v388_v40  ;;  %vm2431_vm5 = vcmp.lt.s32.totalorder %v1824_v4, %v470_v54  ;;  %s2643_s2 = scalar_lea.vmem %s4348_s6, %s1562_s11  ;;  %s2853_s11 = sld [smem:[#allocation7 + %s1787_s22]] }
  0x78   : > { %v479_v43 = vsel %vm473_vm0, %v365_v53, -inf  ;;  %vm2436_vm9 = vcmp.ge.s32.totalorder %v1798_v1, %v500_v47  ;;  %v391_v26 = vmax.f32 %v387_v38, %v390_v27  ;;  %vm2447_vm12 = vcmp.ge.s32.totalorder %v1824_v4, %v500_v47  ;;  %s2877_s13 = sld [smem:[#allocation7 + %s1807_s28]] }
  0x79   : > { %vm504_vm13 = vcmp.lt.s32.totalorder %v1798_v1, %v503_v36  ;;  %vm2453_vm11 = vcmp.lt.s32.totalorder %v1824_v4, %v503_v36  ;;  %v393_v60 = vmax.f32 %v389_v59, %v392_v29  ;;  %v2462_v61 = vstv %s425_s14  ;;  %s2819_s14 = sld [smem:[#allocation5 + %s2176_s12]] }
  0x7a   : > { %vm506_vm1 = vmand %vm2436_vm9, %vm504_vm13  ;;  %v2467_v31 = vstv %s2348_s25  ;;  %v395_v57 = vmax.f32 %v391_v26, %v394_v39  ;;  %v413_v2 = vsel %vm4216_vm2, %v411_v9, -inf  ;;  %v2473_v40 = vstv %s459_s15  ;;  %s2830_s15 = sld [smem:[#allocation6 + %s1807_s28]] }
  0x7b   : > { %v512_v58 = vsel %vm506_vm1, %v365_v53, -inf  ;;  %v448_v44 = vsel %vm4216_vm2, %v446_v16, -inf  ;;  %v481_v27 = vsel %vm4216_vm2, %v479_v43, -inf  ;;  %v2493_v29 = vstv %s492_s24  ;;  %vm507_vm0 = vmand %vm2447_vm12, %vm2453_vm11  ;;  %s2843_s24 = sld [smem:[#allocation7 + %s1829_s8]] }
  0x7c   : > { %v2499_v53 = vstv %s525_s30  ;;  %v396_v54 = vmax.f32 %v393_v60, %v395_v57  ;;  %vm533_vm9 = vcmp.le.s32.totalorder %v2467_v31, 0  ;;  %vm534_vm13 = vcmp.le.s32.totalorder %v2467_v31, 1  ;;  %vm4327_vm12 = vmand %vm2285_vm3, %vm2292_vm8  ;;  %s2850_s30 = sld [smem:[#allocation6 + %s1787_s22]] }
  0x7d   : > { %v2504_v6 = vstv %s2395_s0  ;;  %v514_v39 = vsel %vm4216_vm2, %v512_v58, -inf  ;;  %vm535_vm1 = vcmp.le.s32.totalorder %v2467_v31, 2  ;;  %vm536_vm14 = vcmp.le.s32.totalorder %v2467_v31, 3  ;;  %vm4328_vm11 = vmand %vm2380_vm15, %vm2431_vm5  ;;  %s2902_s28 = sld [smem:[#allocation6 + %s1829_s8]] }
  0x7e   : > { %vm537_vm7 = vcmp.le.s32.totalorder %v2467_v31, 4  ;;  %v412_v9 = vsel %vm406_vm4, %v396_v54, -inf  ;;  %v447_v38 = vsel %vm4327_vm12, %v396_v54, -inf  ;;  %v480_v16 = vsel %vm4328_vm11, %v396_v54, -inf  ;;  %p767_p10 = scmp.le.s32.totalorder %s2877_s13, %s2870_s18  ;;  %s3469_s25 = sld [smem:[#allocation6 + %s1787_s22]] }
  0x7f   : > { %v513_v47 = vsel %vm507_vm0, %v396_v54, -inf  ;;  %v414_v36 = vsel %vm4216_vm2, %v412_v9, -inf  ;;  %v449_v45 = vsel %vm4216_vm2, %v447_v38, -inf  ;;  %v482_v21 = vsel %vm4216_vm2, %v480_v16, -inf  ;;  %p1349_p3 = scmp.le.s32.totalorder %s2819_s14, %s2816_s3  ;;  %s3472_s0 = sld [smem:[#allocation7 + %s1787_s22]] }
  0x80   : > { %v515_v59 = vsel %vm4216_vm2, %v513_v47, -inf  ;;  %v415_v15 = vmax.f32 %v413_v2, %v414_v36  ;;  %v450_v43 = vmax.f32 %v448_v44, %v449_v45  ;;  %v483_v0 = vmax.f32 %v481_v27, %v482_v21  ;;  %p1383_p4 = scmp.le.s32.totalorder %s2833_s21, %s2830_s15 }
  0x81   : > { %v516_v30 = vmax.f32 %v514_v39, %v515_v59  ;;  %vm538_vm6 = vcmp.le.s32.totalorder %v2467_v31, 5  ;;  %vm550_vm2 = vcmp.gt.s32.totalorder %v2504_v6, 0  ;;  %vm551_vm8 = vcmp.gt.s32.totalorder %v2504_v6, 1  ;;  %p1415_p5 = scmp.le.s32.totalorder %s2843_s24, %s2840_s29 }
  0x82   : > { %v416_v18 = vrot.slane %v415_v15, 4  ;;  %v451_v14 = vrot.slane %v450_v43, 4  ;;  %v484_v26 = vrot.slane %v483_v0, 4  ;;  %vm552_vm3 = vcmp.gt.s32.totalorder %v2504_v6, 2  ;;  %vm2556_vm0 = vmand %vm533_vm9, %vm550_vm2  ;;  %p2910_p6 = por %p1383_p4, %p1349_p3  ;;  %p734_p9 = scmp.le.s32.totalorder %s2853_s11, %s2850_s30 }
  0x83   : > { %v517_v33 = vrot.slane %v516_v30, 4  ;;  %vm553_vm15 = vcmp.gt.s32.totalorder %v2504_v6, 3  ;;  %vm554_vm5 = vcmp.gt.s32.totalorder %v2504_v6, 4  ;;  %vm555_vm10 = vcmp.gt.s32.totalorder %v2504_v6, 5  ;;  %vm2571_vm4 = vmand %vm534_vm13, %vm551_vm8  ;;  %p2917_p7 = por %p1415_p5, %p1349_p3  ;;  %p799_p12 = scmp.le.s32.totalorder %s2905_s5, %s2902_s28 }
  0x84   : > { %v417_v50 = vmax.f32 %v415_v15, %v416_v18  ;;  %v452_v60 = vmax.f32 %v450_v43, %v451_v14  ;;  %v485_v57 = vmax.f32 %v483_v0, %v484_v26  ;;  %vm2580_vm9 = vmand %vm535_vm1, %vm552_vm3  ;;  %vm556_vm8 = vcmp.gt.s32.totalorder %v2504_v6, 6  ;;  %p2996_p0 = por %p734_p9, %p733_p8  ;;  %p3025_p4 = por %p767_p10, %p733_p8 }
  0x85   : > { %v518_v2 = vmax.f32 %v516_v30, %v517_v33  ;;  %vm2592_vm2 = vmand %vm536_vm14, %vm553_vm15  ;;  %vm559_vm14 = vcmp.gt.s32.totalorder %v2504_v6, 9  ;;  %vm4345_vm13 = vcmp.le.s32.totalorder %v2467_v31, 7  ;;  %v614_v33 = vsel %vm2556_vm0, %v1843_v5, -inf  ;;  %s4418_s4 = scalar_select %p2917_p7, 1, 0 }
  0x86   : > { %v418_v27 = vrot.slane %v417_v50, 2  ;;  %v453_v54 = vrot.slane %v452_v60, 2  ;;  %v486_v39 = vrot.slane %v485_v57, 2  ;;  %vm2600_vm1 = vmand %vm537_vm7, %vm554_vm5  ;;  %vm4341_vm7 = vcmp.le.s32.totalorder %v2467_v31, 6  ;;  %p3052_p5 = por %p799_p12, %p733_p8  ;;  %p3071_p9 = por %p831_p2, %p733_p8 }
  0x87   : > { %v519_v9 = vrot.slane %v518_v2, 2  ;;  %vm2614_vm12 = vmand %vm538_vm6, %vm555_vm10  ;;  %vm4344_vm10 = vcmp.gt.s32.totalorder %v2504_v6, 7  ;;  %v4354_v5 = vmov 0  ;;  %vm4360_vm11 = vcmp.gt.s32.totalorder %v2504_v6, 10  ;;  %4419 = sst [smem:[#allocation13_spill]] %s4418_s4  ;;  %p1042_p8 = scmp.le.s32.totalorder %s3472_s0, %s3469_s25 }
  0x88   : > { %v419_v47 = vmax.f32 %v417_v50, %v418_v27  ;;  %v454_v36 = vmax.f32 %v452_v60, %v453_v54  ;;  %v487_v45 = vmax.f32 %v485_v57, %v486_v39  ;;  %vm2622_vm5 = vmand %vm4341_vm7, %vm556_vm8  ;;  %vm4350_vm8 = vcmp.le.s32.totalorder %v2467_v31, 8  ;;  %s769_s4 = scalar_select %p3025_p4, 1, 0 }
  0x89   : > { %v520_v21 = vmax.f32 %v518_v2, %v519_v9  ;;  %vm2633_vm15 = vmand %vm4345_vm13, %vm4344_vm10  ;;  %vm4349_vm13 = vcmp.gt.s32.totalorder %v2504_v6, 8  ;;  %v4351_v27 = vmov 0  ;;  %vm4353_vm10 = vcmp.le.s32.totalorder %v2467_v31, 9  ;;  %p3578_p10 = por %p1042_p8, %p1041_p11 }
  0x8a   : > { %v420_v43 = vrot.slane %v419_v47, 1  ;;  %v455_v0 = vrot.slane %v454_v36, 1  ;;  %v488_v30 = vrot.slane %v487_v45, 1  ;;  %vm2649_vm7 = vmand %vm4350_vm8, %vm4349_vm13  ;;  %v615_v54 = vsel %vm2556_vm0, %v1851_v7, -inf }
  0x8b   : > { %v521_v18 = vrot.slane %v520_v21, 1  ;;  %v4352_v27 = vsel %vm2649_vm7, 4294967295, %v4351_v27  ;;  %vm2657_vm6 = vmand %vm4353_vm10, %vm559_vm14  ;;  %v616_v39 = vsel %vm2571_vm4, %v1854_v8, -inf  ;;  %v617_v9 = vsel %vm2571_vm4, %v1878_v12, -inf }
  0x8c   : > { %v421_v50 = vmax.f32 %v419_v47, %v420_v43  ;;  %v456_v60 = vmax.f32 %v454_v36, %v455_v0  ;;  %v489_v57 = vmax.f32 %v487_v45, %v488_v30  ;;  %v4355_v5 = vsel %vm2657_vm6, 4294967295, %v4354_v5 }
  0x8d   : > { %v522_v2 = vmax.f32 %v520_v21, %v521_v18  ;;  %v618_v47 = vsel %vm2580_vm9, %v1862_v10, -inf  ;;  %vm4356_vm14 = vcmp.eq.s32.totalorder %v2462_v61, 1  ;;  %vm4357_vm13 = vcmp.eq.s32.totalorder %v2473_v40, 1 }
  0x8e   : > { %v428_v36 = vsel %vm4356_vm14, 0.0, %v421_v50  ;;  %v462_v45 = vsel %vm4357_vm13, 0.0, %v456_v60  ;;  %vm4358_vm8 = vcmp.eq.s32.totalorder %v2493_v29, 1  ;;  %vm4359_vm10 = vcmp.eq.s32.totalorder %v2499_v53, 1 }
  0x8f   : > { %v495_v21 = vsel %vm4358_vm8, 0.0, %v489_v57  ;;  %v528_v8 = vsel %vm4359_vm10, 0.0, %v522_v2  ;;  %vm4361_vm3 = vcmp.le.s32.totalorder %v2467_v31, 10  ;;  %vm4364_vm0 = vcmask 24576  }
  0x90   : > { %vm2685_vm4 = vmand %vm4361_vm3, %vm4360_vm11  ;;  %430 = vst.msk [vmem:[%s2643_s2] sm:$0x1] %vm4364_vm0, %v428_v36  ;;  %vm4368_vm8 = vcmp.gt.s32.totalorder %v2504_v6, 11  ;;  %vm4369_vm10 = vcmp.le.s32.totalorder %v2467_v31, 11  ;;  %v619_v61 = vsel %vm2580_vm9, %v1919_v22, -inf  ;;  %v620_v40 = vsel %vm2592_vm2, %v1881_v13, -inf }
  0x91   : > { %vm4365_vm14 = vmmov %vm4364_vm0  ;;  %v621_v29 = vsel %vm2592_vm2, %v1961_v34, -inf  ;;  %v622_v53 = vsel %vm2600_vm1, %v1899_v17, -inf  ;;  %vm4373_vm11 = vcmp.le.s32.totalorder %v2467_v31, 12  ;;  %v623_v13 = vsel %vm2600_vm1, %v1982_v41, -inf }
  0x92   : > { %463 = vst.msk [vmem:[%s2643_s2 + $0x1] sm:$0x1] %vm4365_vm14, %v462_v45  ;;  %vm4366_vm6 = vmmov %vm4364_vm0  ;;  %v624_v22 = vsel %vm2614_vm12, %v1922_v23, -inf  ;;  %v625_v17 = vsel %vm2614_vm12, %v2003_v48, -inf  ;;  %v626_v34 = vsel %vm2622_vm5, %v1940_v28, -inf  ;;  %vm4376_vm2 = vcmp.gt.s32.totalorder %v2504_v6, 13 }
  0x93   : > { %496 = vst.msk [vmem:[%s2643_s2 + $0x2] sm:$0x1] %vm4366_vm6, %v495_v21  ;;  %vm4367_vm13 = vmmov %vm4364_vm0  ;;  %vm4372_vm0 = vcmp.gt.s32.totalorder %v2504_v6, 12  ;;  %vm4377_vm9 = vcmp.le.s32.totalorder %v2467_v31, 13  ;;  %v627_v23 = vsel %vm2622_vm5, %v2024_v55, -inf  ;;  %v628_v41 = vsel %vm2633_vm15, %v1964_v35, -inf }
  0x94   : > { %529 = vst.msk [vmem:[%s2643_s2 + $0x3] sm:$0x1] %vm4367_vm13, %v528_v8  ;;  %vm2701_vm7 = vmand %vm4369_vm10, %vm4368_vm8  ;;  %v629_v28 = vsel %vm2633_vm15, %v2049_v62, -inf  ;;  %vm4380_vm12 = vnez %v4352_v27  ;;  %vm4381_vm1 = vcmp.gt.s32.totalorder %v2504_v6, 14  ;;  %vm4382_vm14 = vcmp.le.s32.totalorder %v2467_v31, 14 }
  0x95   : > { %vm2721_vm3 = vmand %vm4373_vm11, %vm4372_vm0  ;;  %v630_v48 = vsel %vm4380_vm12, %v1985_v42, -inf  ;;  %v631_v35 = vsel %vm4380_vm12, %v2070_v19, -inf  ;;  %vm4385_vm5 = vnez %v4355_v5  ;;  %v634_v62 = vsel %vm2685_vm4, %v2027_v56, -inf }
  0x96   : > { %vm2741_vm6 = vmand %vm4377_vm9, %vm4376_vm2  ;;  %v632_v55 = vsel %vm4385_vm5, %v2006_v49, -inf  ;;  %v633_v42 = vsel %vm4385_vm5, %v2093_v32, -inf  ;;  %v635_v59 = vsel %vm2685_vm4, %v2131_v51, -inf  ;;  %v636_v15 = vsel %vm2701_vm7, %v2052_v63, -inf }
  0x97   : > { %vm2761_vm13 = vmand %vm4382_vm14, %vm4381_vm1  ;;  %v637_v49 = vsel %vm2701_vm7, %v2243_v3, -inf  ;;  %v638_v30 = vsel %vm2721_vm3, %v2073_v20, -inf  ;;  %vm4386_vm15 = vcmp.gt.s32.totalorder %v2504_v6, 15  ;;  %vm4387_vm8 = vcmp.le.s32.totalorder %v2467_v31, 15 }
  0x98   : > { %vm2793_vm10 = vmand %vm4387_vm8, %vm4386_vm15  ;;  %v639_v63 = vsel %vm2721_vm3, %v2269_v11, -inf  ;;  %v640_v18 = vsel %vm2741_vm6, %v2096_v37, -inf  ;;  %v641_v20 = vsel %vm2741_vm6, %v2272_v25, -inf  ;;  %v642_v31 = vsel %vm2761_vm13, %v2134_v52, -inf }
  0x99   : > { %vm4390_vm0 = vcmask 31744   ;;  %v643_v52 = vsel %vm2761_vm13, %v2299_v24, -inf  ;;  %v645_v45 = vsel %vm2793_vm10, %v2311_v46, -inf  ;;  %v747_v16 = vstv %s2877_s13  ;;  %s3511_s13 = sld [smem:[#allocation6 + %s1829_s8]] }
  0x9a   : > { %v646_v6 = vsel %vm4390_vm0, %v614_v33, -inf  ;;  %vm4391_vm11 = vmmov %vm4390_vm0  ;;  %v4396_v33 = vld [vmem:[#allocation12_spill] sm:$0xff] }
  0x9b   : > { %v647_v14 = vsel %vm4391_vm11, %v616_v39, -inf  ;;  %vm4392_vm2 = vmmov %vm4390_vm0  ;;  %v644_v39 = vsel %vm2793_vm10, %v4396_v33, -inf }
  0x9c   : > { %v648_v26 = vsel %vm4392_vm2, %v618_v47, -inf  ;;  %vm4393_vm9 = vmmov %vm4390_vm0 }
  0x9d   : > { %v650_v50 = vsel %vm4393_vm9, %v620_v40, -inf  ;;  %v649_v60 = vmax.f32 %v646_v6, %v648_v26  ;;  %vm4394_vm1 = vmmov %vm4390_vm0  ;;  %v660_v40 = vsel %vm4390_vm0, %v630_v48, -inf }
  0x9e   : > { %v651_v37 = vmax.f32 %v647_v14, %v650_v50  ;;  %v652_v57 = vsel %vm4394_vm1, %v622_v53, -inf  ;;  %vm4395_vm14 = vmmov %vm4390_vm0 }
  0x9f   : > { %v654_v2 = vsel %vm4395_vm14, %v624_v22, -inf  ;;  %vm4397_vm15 = vmmov %vm4390_vm0  ;;  %v653_v21 = vmax.f32 %v649_v60, %v652_v57 }
  0xa0   : > { %v656_v47 = vsel %vm4397_vm15, %v626_v34, -inf  ;;  %vm4398_vm8 = vmmov %vm4390_vm0  ;;  %v655_v8 = vmax.f32 %v651_v37, %v654_v2 }
  0xa1   : > { %v658_v36 = vsel %vm4398_vm8, %v628_v41, -inf  ;;  %vm4399_vm11 = vmmov %vm4390_vm0  ;;  %v657_v6 = vmax.f32 %v653_v21, %v656_v47  ;;  %v776_v21 = vstv %s2902_s28  ;;  %s3538_s28 = sld [smem:[#allocation7 + %s1829_s8]] }
  0xa2   : > { %v662_v53 = vsel %vm4399_vm11, %v632_v55, -inf  ;;  %vm4400_vm2 = vmmov %vm4390_vm0  ;;  %v659_v14 = vmax.f32 %v655_v8, %v658_v36  ;;  %v678_v55 = vsel %vm4390_vm0, %v617_v9, -inf  ;;  %s1044_s8 = scalar_select %p3578_p10, 1, 0 }
  0xa3   : > { %v664_v22 = vsel %vm4400_vm2, %v634_v62, -inf  ;;  %vm4401_vm9 = vmmov %vm4390_vm0  ;;  %v661_v7 = vmax.f32 %v657_v6, %v660_v40 }
  0xa4   : > { %v666_v34 = vsel %vm4401_vm9, %v636_v15, -inf  ;;  %vm4402_vm1 = vmmov %vm4390_vm0  ;;  %v663_v44 = vmax.f32 %v659_v14, %v662_v53  ;;  %v808_v14 = vstv %s2934_s19  ;;  %s801_s19 = scalar_select %p3052_p5, 1, 0 }
  0xa5   : > { %v668_v41 = vsel %vm4402_vm1, %v638_v30, -inf  ;;  %vm4404_vm15 = vmmov %vm4390_vm0 }
  0xa6   : > { %v677_v48 = vsel %vm4404_vm15, %v615_v54, -inf  ;;  %vm4406_vm11 = vmmov %vm4390_vm0  ;;  %v667_v26 = vmax.f32 %v663_v44, %v666_v34 }
  0xa7   : > { %v679_v62 = vsel %vm4406_vm11, %v619_v61, -inf  ;;  %vm4407_vm2 = vmmov %vm4390_vm0  ;;  %p1107_p12 = scmp.le.s32.totalorder %s3538_s28, %s3511_s13 }
  0xa8   : > { %v681_v15 = vsel %vm4407_vm2, %v621_v29, -inf  ;;  %vm4408_vm9 = vmmov %vm4390_vm0  ;;  %v680_v54 = vmax.f32 %v677_v48, %v679_v62 }
  0xa9   : > { %v683_v30 = vsel %vm4408_vm9, %v623_v13, -inf  ;;  %vm4409_vm1 = vmmov %vm4390_vm0  ;;  %v682_v12 = vmax.f32 %v678_v55, %v681_v15  ;;  %v689_v13 = vsel %vm4390_vm0, %v629_v28, -inf  ;;  %v811_v15 = vstv %s2937_s20  ;;  %s833_s20 = scalar_select %p3071_p9, 1, 0 }
  0xaa   : > { %v685_v58 = vsel %vm4409_vm1, %v625_v17, -inf  ;;  %vm4410_vm14 = vmmov %vm4390_vm0  ;;  %v665_v17 = vmax.f32 %v661_v7, %v664_v22  ;;  %v684_v50 = vmax.f32 %v680_v54, %v683_v30  ;;  %v779_v22 = vstv %s2905_s5 }
  0xab   : > { %v670_v9 = vsel %vm4410_vm14, %v640_v18, -inf  ;;  %vm4411_vm15 = vmmov %vm4390_vm0  ;;  %v686_v60 = vmax.f32 %v682_v12, %v685_v58 }
  0xac   : > { %v672_v61 = vsel %vm4411_vm15, %v642_v31, -inf  ;;  %vm4412_vm8 = vmmov %vm4390_vm0  ;;  %v669_v19 = vmax.f32 %v665_v17, %v668_v41  ;;  %v671_v27 = vmax.f32 %v667_v26, %v670_v9 }
  0xad   : > { %v687_v29 = vsel %vm4412_vm8, %v627_v23, -inf  ;;  %vm4413_vm11 = vmmov %vm4390_vm0  ;;  %v690_v5 = vmax.f32 %v686_v60, %v689_v13 }
  0xae   : > { %v674_v18 = vsel %vm4413_vm11, %v644_v39, -inf  ;;  %vm4414_vm2 = vmmov %vm4390_vm0  ;;  %v688_v32 = vmax.f32 %v684_v50, %v687_v29  ;;  %v744_v39 = vstv %s2870_s18  ;;  %s736_s18 = scalar_select %p2996_p0, 1, 0  ;;  %v770_v50 = vstv %s769_s4  ;;  %v3269_v29 = vld [vmem:[%s1821_s7 + $0x38] sm:$0xff] }
  0xaf   : > { %v691_v23 = vsel %vm4414_vm2, %v631_v35, -inf  ;;  %vm4415_vm9 = vmmov %vm4390_vm0  ;;  %v710_v35 = vstv %s2850_s30  ;;  %v675_v10 = vmax.f32 %v671_v27, %v674_v18  ;;  %vm745_vm13 = vcmp.ge.s32.totalorder %v1798_v1, %v744_v39  ;;  %p3652_p0 = por %p1107_p12, %p1041_p11 }
  0xb0   : > { %v693_v28 = vsel %vm4415_vm9, %v633_v42, -inf  ;;  %vm4416_vm1 = vmmov %vm4390_vm0  ;;  %v713_v42 = vstv %s2853_s11  ;;  %v692_v37 = vmax.f32 %v688_v32, %v691_v23  ;;  %vm2949_vm3 = vcmp.ge.s32.totalorder %v1798_v1, %v710_v35 }
  0xb1   : > { %v695_v31 = vsel %vm4416_vm1, %v635_v59, -inf  ;;  %vm4420_vm4 = vmmov %vm4390_vm0  ;;  %v673_v59 = vmax.f32 %v669_v19, %v672_v61  ;;  %v694_v3 = vmax.f32 %v690_v5, %v693_v28  ;;  %vm2954_vm5 = vcmp.ge.s32.totalorder %v1824_v4, %v710_v35 }
  0xb2   : > { %v697_v51 = vsel %vm4420_vm4, %v637_v49, -inf  ;;  %vm4421_vm12 = vmmov %vm4390_vm0  ;;  %vm2959_vm14 = vcmp.lt.s32.totalorder %v1798_v1, %v713_v42  ;;  %vm2966_vm6 = vcmp.lt.s32.totalorder %v1824_v4, %v713_v42  ;;  %vm3006_vm11 = vcmp.ge.s32.totalorder %v1824_v4, %v744_v39 }
  0xb3   : > { %v699_v43 = vsel %vm4421_vm12, %v639_v63, -inf  ;;  %vm4422_vm7 = vmmov %vm4390_vm0  ;;  %v2963_v25 = vmax.f32 %v673_v59, %v675_v10  ;;  %v696_v63 = vmax.f32 %v692_v37, %v695_v31  ;;  %vm748_vm2 = vcmp.lt.s32.totalorder %v1798_v1, %v747_v16 }
  0xb4   : > { %v701_v11 = vsel %vm4422_vm7, %v641_v20, -inf  ;;  %v698_v20 = vmax.f32 %v694_v3, %v697_v51  ;;  %vm4431_vm15 = vmmov %vm4390_vm0  ;;  %vm3012_vm9 = vcmp.lt.s32.totalorder %v1824_v4, %v747_v16  ;;  %vm3036_vm12 = vcmp.ge.s32.totalorder %v1798_v1, %v776_v21 }
  0xb5   : > { %v703_v2 = vsel %vm4431_vm15, %v643_v52, -inf  ;;  %vm4432_vm8 = vmmov %vm4390_vm0  ;;  %v700_v24 = vmax.f32 %v696_v63, %v699_v43  ;;  %vm3041_vm7 = vcmp.ge.s32.totalorder %v1824_v4, %v776_v21  ;;  %v737_v17 = vstv %s736_s18 }
  0xb6   : > { %v705_v33 = vsel %vm4432_vm8, %v645_v45, -inf  ;;  %vm716_vm0 = vmand %vm2949_vm3, %vm2959_vm14  ;;  %v702_v52 = vmax.f32 %v698_v20, %v701_v11  ;;  %vm780_vm3 = vcmp.lt.s32.totalorder %v1798_v1, %v779_v22  ;;  %vm781_vm14 = vcmp.lt.s32.totalorder %v1824_v4, %v779_v22  ;;  %v3207_v22 = vld [vmem:[%s1821_s7] sm:$0xff] }
  0xb7   : > { %vm717_vm10 = vmand %vm2954_vm5, %vm2966_vm6  ;;  %v704_v47 = vmax.f32 %v700_v24, %v703_v2  ;;  %v722_v45 = vsel %vm716_vm0, %v2963_v25, -inf  ;;  %v802_v18 = vstv %s801_s19  ;;  %v3111_v28 = vstv %s2328_s16  ;;  %s1077_s16 = scalar_select %p2482_p13, 1, 0 }
  0xb8   : > { %v706_v36 = vmax.f32 %v702_v52, %v705_v33  ;;  %vm750_vm1 = vmand %vm745_vm13, %vm748_vm2  ;;  %v3115_v59 = vstv %s833_s20  ;;  %v3129_v33 = vstv %s2331_s17  ;;  %s1109_s17 = scalar_select %p3652_p0, 1, 0 }
  0xb9   : > { %vm751_vm4 = vmand %vm3006_vm11, %vm3012_vm9  ;;  %v756_v8 = vsel %vm750_vm1, %v2963_v25, -inf  ;;  %vm3099_vm11 = vcmp.ge.s32.totalorder %v1824_v4, %v808_v14  ;;  %vm812_vm9 = vcmp.lt.s32.totalorder %v1798_v1, %v811_v15 }
  0xba   : > { %v707_v34 = vmax.f32 %v704_v47, %v706_v36  ;;  %vm4444_vm15 = vmmov %vm4432_vm8  ;;  %v758_v6 = vsel %vm4432_vm8, %v756_v8, -inf }
  0xbb   : > { %v724_v41 = vsel %vm4444_vm15, %v722_v45, -inf  ;;  %vm782_vm0 = vmand %vm3036_vm12, %vm780_vm3 }
  0xbc   : > { %v723_v48 = vsel %vm717_vm10, %v707_v34, -inf  ;;  %v757_v55 = vsel %vm751_vm4, %v707_v34, -inf  ;;  %vm783_vm13 = vmand %vm3041_vm7, %vm781_vm14  ;;  %v788_v62 = vsel %vm782_vm0, %v2963_v25, -inf  ;;  %vm809_vm10 = vcmp.ge.s32.totalorder %v1798_v1, %v808_v14  ;;  %v3223_v14 = vld [vmem:[%s1821_s7 + $0x8] sm:$0xff] }
  0xbd   : > { %vm4446_vm2 = vmmov %vm4432_vm8  ;;  %v789_v7 = vsel %vm783_vm13, %v707_v34, -inf  ;;  %vm813_vm4 = vcmp.lt.s32.totalorder %v1824_v4, %v811_v15  ;;  %vm738_vm14 = vcmp.eq.s32.totalorder %v737_v17, 1  ;;  %vm771_vm8 = vcmp.eq.s32.totalorder %v770_v50, 1  ;;  %v3235_v15 = vld [vmem:[%s1821_s7 + $0x18] sm:$0xff] }
  0xbe   : > { %v725_v30 = vsel %vm4446_vm2, %v723_v48, -inf  ;;  %vm4447_vm1 = vmmov %vm4446_vm2  ;;  %vm803_vm0 = vcmp.eq.s32.totalorder %v802_v18, 1  ;;  %vm841_vm13 = vcmp.le.s32.totalorder %v3111_v28, 0  ;;  %vm842_vm2 = vcmp.le.s32.totalorder %v3111_v28, 1  ;;  %v3461_v18 = vld [vmem:[%s1821_s7 + $0xf0] sm:$0xff] }
  0xbf   : > { %v759_v58 = vsel %vm4447_vm1, %v757_v55, -inf  ;;  %vm4448_vm5 = vmmov %vm4447_vm1  ;;  %v726_v54 = vmax.f32 %v724_v41, %v725_v30  ;;  %v3229_v55 = vld [vmem:[%s1821_s7 + $0x10] sm:$0xff]  ;;  %v4480_v17 = vmov 0  ;;  %4518 = vst [vmem:[#allocation14_spill] sm:$0xff] %v3461_v18 }
  0xc0   : > { %v790_v44 = vsel %vm4448_vm5, %v788_v62, -inf  ;;  %v760_v12 = vmax.f32 %v758_v6, %v759_v58  ;;  %vm4449_vm6 = vmmov %vm4447_vm1  ;;  %vm843_vm5 = vcmp.le.s32.totalorder %v3111_v28, 2  ;;  %v4477_v58 = vmov 0 }
  0xc1   : > { %v791_v9 = vsel %vm4449_vm6, %v789_v7, -inf  ;;  %v727_v13 = vrot.slane %v726_v54, 4  ;;  %vm814_vm12 = vmand %vm809_vm10, %vm812_vm9  ;;  %vm844_vm6 = vcmp.le.s32.totalorder %v3111_v28, 3  ;;  %vm860_vm9 = vcmp.gt.s32.totalorder %v3129_v33, 2  ;;  %v3251_v7 = vld [vmem:[%s1821_s7 + $0x20] sm:$0xff] }
  0xc2   : > { %v792_v61 = vmax.f32 %v790_v44, %v791_v9  ;;  %v761_v26 = vrot.slane %v760_v12, 4  ;;  %vm815_vm7 = vmand %vm3099_vm11, %vm813_vm4  ;;  %v820_v23 = vsel %vm814_vm12, %v2963_v25, -inf  ;;  %vm861_vm12 = vcmp.gt.s32.totalorder %v3129_v33, 3  ;;  %v3263_v9 = vld [vmem:[%s1821_s7 + $0x30] sm:$0xff] }
  0xc3   : > { %v728_v31 = vmax.f32 %v726_v54, %v727_v13  ;;  %v821_v27 = vsel %vm815_vm7, %v707_v34, -inf  ;;  %vm4452_vm3 = vmmov %vm4447_vm1  ;;  %vm4456_vm4 = vcmask 24576   ;;  %vm4468_vm11 = vcmp.le.s32.totalorder %v3111_v28, 5  ;;  %v3257_v54 = vld [vmem:[%s1821_s7 + $0x28] sm:$0xff] }
  0xc4   : > { %v793_v60 = vrot.slane %v792_v61, 4  ;;  %v762_v19 = vmax.f32 %v760_v12, %v761_v26  ;;  %v822_v32 = vsel %vm4452_vm3, %v820_v23, -inf  ;;  %vm4453_vm15 = vmmov %vm4447_vm1  ;;  %vm858_vm3 = vcmp.gt.s32.totalorder %v3129_v33, 0  ;;  %v3283_v26 = vld [vmem:[%s1821_s7 + $0x40] sm:$0xff]  ;;  %v3295_v23 = vld [vmem:[%s1821_s7 + $0x50] sm:$0xff] }
  0xc5   : > { %v823_v51 = vsel %vm4453_vm15, %v821_v27, -inf  ;;  %v729_v43 = vrot.slane %v728_v31, 2  ;;  %vm859_vm15 = vcmp.gt.s32.totalorder %v3129_v33, 1  ;;  %vm3139_vm7 = vmand %vm841_vm13, %vm858_vm3  ;;  %v3455_v27 = vld [vmem:[%s1821_s7 + $0xb8] sm:$0xff] }
  0xc6   : > { %v794_v5 = vmax.f32 %v792_v61, %v793_v60  ;;  %v763_v35 = vrot.slane %v762_v19, 2  ;;  %v824_v42 = vmax.f32 %v822_v32, %v823_v51  ;;  %vm4457_vm1 = vmmov %vm4456_vm4  ;;  %v922_v34 = vsel %vm3139_vm7, %v3207_v22, -inf  ;;  %v3289_v60 = vld [vmem:[%s1821_s7 + $0x48] sm:$0xff]  ;;  %4517 = vst [vmem:[#allocation12_spill] sm:$0xff] %v3455_v27 }
  0xc7   : > { %v730_v37 = vmax.f32 %v728_v31, %v729_v43  ;;  %vm3153_vm10 = vmand %vm842_vm2, %vm859_vm15  ;;  %vm864_vm15 = vcmp.gt.s32.totalorder %v3129_v33, 6  ;;  %v4484_v32 = vmov 0  ;;  %v3321_v43 = vld [vmem:[%s1821_s7 + $0x68] sm:$0xff] }
  0xc8   : > { %v795_v10 = vrot.slane %v794_v5, 2  ;;  %v764_v3 = vmax.f32 %v762_v19, %v763_v35  ;;  %v825_v11 = vrot.slane %v824_v42, 4  ;;  %vm4460_vm13 = vmmov %vm4457_vm1  ;;  %v924_v62 = vsel %vm3153_vm10, %v3229_v55, -inf  ;;  %v3301_v19 = vld [vmem:[%s1821_s7 + $0x58] sm:$0xff]  ;;  %v3449_v35 = vld [vmem:[%s1821_s7 + $0xe0] sm:$0xff] }
  0xc9   : > { %v731_v49 = vrot.slane %v730_v37, 1  ;;  %vm3166_vm3 = vmand %vm843_vm5, %vm860_vm9 }
  0xca   : > { %v796_v0 = vmax.f32 %v794_v5, %v795_v10  ;;  %v765_v38 = vrot.slane %v764_v3, 1  ;;  %v826_v25 = vmax.f32 %v824_v42, %v825_v11  ;;  %vm3179_vm5 = vmand %vm844_vm6, %vm861_vm12  ;;  %v926_v44 = vsel %vm3166_vm3, %v3251_v7, -inf  ;;  %v3315_v5 = vld [vmem:[%s1821_s7 + $0x60] sm:$0xff]  ;;  %v3343_v11 = vld [vmem:[%s1821_s7 + $0x78] sm:$0xff] }
  0xcb   : > { %v732_v20 = vmax.f32 %v730_v37, %v731_v49  ;;  %v928_v61 = vsel %vm3179_vm5, %v3263_v9, -inf  ;;  %v4490_v10 = vmov 0  ;;  %v3337_v37 = vld [vmem:[%s1821_s7 + $0x70] sm:$0xff]  ;;  %v4532_v46 = vsel %vm3179_vm5, %v3269_v29, -inf }
  0xcc   : > { %v797_v63 = vrot.slane %v796_v0, 1  ;;  %v766_v57 = vmax.f32 %v764_v3, %v765_v38  ;;  %v827_v2 = vrot.slane %v826_v25, 2 }
  0xcd   : > { %v739_v16 = vsel %vm738_vm14, 0.0, %v732_v20 }
  0xce   : > { %v798_v39 = vmax.f32 %v796_v0, %v797_v63  ;;  %v772_v24 = vsel %vm771_vm8, 0.0, %v766_v57  ;;  %v828_v52 = vmax.f32 %v826_v25, %v827_v2  ;;  %1547 = vst.msk [vmem:[%s2643_s2 + $0x4] sm:$0x1] %vm4456_vm4, %v739_v16  ;;  %vm862_vm8 = vcmp.gt.s32.totalorder %v3129_v33, 4  ;;  %v3359_v63 = vld [vmem:[%s1821_s7 + $0x80] sm:$0xff]  ;;  %v3365_v57 = vld [vmem:[%s1821_s7 + $0x88] sm:$0xff] }
  0xcf   : > { %1548 = vst.msk [vmem:[%s2643_s2 + $0x5] sm:$0x1] %vm4457_vm1, %v772_v24  ;;  %vm866_vm4 = vcmp.gt.s32.totalorder %v3129_v33, 8  ;;  %vm4465_vm1 = vcmp.le.s32.totalorder %v3111_v28, 4  ;;  %v3427_v2 = vld [vmem:[%s1821_s7 + $0xc0] sm:$0xff] }
  0xd0   : > { %v804_v56 = vsel %vm803_vm0, 0.0, %v798_v39  ;;  %v829_v36 = vrot.slane %v828_v52, 1  ;;  %vm863_vm0 = vcmp.gt.s32.totalorder %v3129_v33, 5  ;;  %vm3191_vm6 = vmand %vm4465_vm1, %vm862_vm8  ;;  %vm4471_vm8 = vcmp.eq.s32.totalorder %v3115_v59, 1 }
  0xd1   : > { %1549 = vst.msk [vmem:[%s2643_s2 + $0x6] sm:$0x1] %vm4460_vm13, %v804_v56  ;;  %vm865_vm13 = vcmp.gt.s32.totalorder %v3129_v33, 7  ;;  %vm3202_vm14 = vmand %vm4468_vm11, %vm863_vm0  ;;  %vm4472_vm1 = vcmp.le.s32.totalorder %v3111_v28, 6  ;;  %vm4475_vm11 = vcmask 24576   ;;  %vm4476_vm0 = vcmp.le.s32.totalorder %v3111_v28, 7 }
  0xd2   : > { %v830_v8 = vmax.f32 %v828_v52, %v829_v36  ;;  %vm3218_vm2 = vmand %vm4472_vm1, %vm864_vm15  ;;  %v930_v50 = vsel %vm3191_vm6, %v3283_v26, -inf  ;;  %v932_v31 = vsel %vm3202_vm14, %v3295_v23, -inf  ;;  %vm4483_vm1 = vcmp.le.s32.totalorder %v3111_v28, 9  ;;  %v3379_v52 = vld [vmem:[%s1821_s7 + $0x90] sm:$0xff]  ;;  %v3385_v36 = vld [vmem:[%s1821_s7 + $0x98] sm:$0xff] }
  0xd3   : > { %vm3246_vm15 = vmand %vm4476_vm0, %vm865_vm13  ;;  %vm4479_vm13 = vcmp.le.s32.totalorder %v3111_v28, 8  ;;  %v934_v51 = vsel %vm3218_vm2, %v3315_v5, -inf  ;;  %vm4486_vm0 = vcmask 31744   ;;  %v4534_v47 = vsel %vm3191_vm6, %v3289_v60, -inf }
  0xd4   : > { %v836_v41 = vsel %vm4471_vm8, 0.0, %v830_v8  ;;  %v4478_v58 = vsel %vm3246_vm15, 4294967295, %v4477_v58  ;;  %vm3278_vm8 = vmand %vm4479_vm13, %vm866_vm4  ;;  %vm4482_vm4 = vcmp.gt.s32.totalorder %v3129_v33, 9  ;;  %v954_v42 = vsel %vm4486_vm0, %v922_v34, -inf }
  0xd5   : > { %1550 = vst.msk [vmem:[%s2643_s2 + $0x7] sm:$0x1] %vm4475_vm11, %v836_v41  ;;  %v4481_v17 = vsel %vm3278_vm8, 4294967295, %v4480_v17  ;;  %vm3310_vm11 = vmand %vm4483_vm1, %vm4482_vm4  ;;  %vm4488_vm4 = vcmp.gt.s32.totalorder %v3129_v33, 10  ;;  %vm4489_vm1 = vcmp.le.s32.totalorder %v3111_v28, 10  ;;  %v936_v3 = vsel %vm3246_vm15, %v3337_v37, -inf }
  0xd6   : > { %v4485_v32 = vsel %vm3310_vm11, 4294967295, %v4484_v32  ;;  %vm4487_vm13 = vmmov %vm4486_vm0  ;;  %v956_v49 = vsel %vm4486_vm0, %v926_v44, -inf  ;;  %v938_v20 = vsel %vm3278_vm8, %v3359_v63, -inf  ;;  %v940_v56 = vsel %vm3310_vm11, %v3379_v52, -inf  ;;  %v3401_v44 = vld [vmem:[%s1821_s7 + $0xa0] sm:$0xff] }
  0xd7   : > { %v955_v59 = vsel %vm4487_vm13, %v924_v62, -inf  ;;  %vm3332_vm9 = vmand %vm4489_vm1, %vm4488_vm4  ;;  %vm4493_vm4 = vcmp.gt.s32.totalorder %v3129_v33, 11  ;;  %vm4494_vm1 = vcmp.le.s32.totalorder %v3111_v28, 11  ;;  %v957_v39 = vmax.f32 %v954_v42, %v956_v49  ;;  %v3407_v42 = vld [vmem:[%s1821_s7 + $0xa8] sm:$0xff] }
  0xd8   : > { %v4491_v10 = vsel %vm3332_vm9, 4294967295, %v4490_v10  ;;  %vm4492_vm13 = vmmov %vm4486_vm0  ;;  %vm4497_vm0 = vcmp.gt.s32.totalorder %v3129_v33, 12  ;;  %v4509_v49 = vmov 0  ;;  %v4536_v45 = vsel %vm3202_vm14, %v3301_v19, -inf }
  0xd9   : > { %v958_v38 = vsel %vm4492_vm13, %v928_v61, -inf  ;;  %vm3354_vm12 = vmand %vm4494_vm1, %vm4493_vm4  ;;  %vm4498_vm13 = vcmp.le.s32.totalorder %v3111_v28, 12  ;;  %vm4501_vm1 = vcmask 31744   ;;  %v942_v61 = vsel %vm3332_vm9, %v3401_v44, -inf }
  0xda   : > { %v959_v16 = vmax.f32 %v955_v59, %v958_v38  ;;  %vm3374_vm4 = vmand %vm4498_vm13, %vm4497_vm0  ;;  %v960_v34 = vsel %vm4501_vm1, %v930_v50, -inf  ;;  %vm4503_vm0 = vcmp.gt.s32.totalorder %v3129_v33, 13  ;;  %vm4504_vm13 = vcmp.le.s32.totalorder %v3111_v28, 13  ;;  %v3421_v38 = vld [vmem:[%s1821_s7 + $0xb0] sm:$0xff] }
  0xdb   : > { %vm4502_vm8 = vmmov %vm4501_vm1  ;;  %vm4508_vm1 = vcmp.le.s32.totalorder %v3111_v28, 14  ;;  %v944_v8 = vsel %vm3354_vm12, %v3421_v38, -inf  ;;  %vm4514_vm9 = vcmp.le.s32.totalorder %v3111_v28, 15  ;;  %v3443_v50 = vld [vmem:[%s1821_s7 + $0xd0] sm:$0xff]  ;;  %v945_v28 = vsel %vm3354_vm12, %v3455_v27, -inf }
  0xdc   : > { %v962_v41 = vsel %vm4502_vm8, %v932_v31, -inf  ;;  %vm3396_vm15 = vmand %vm4504_vm13, %vm4503_vm0  ;;  %v961_v31 = vmax.f32 %v957_v39, %v960_v34  ;;  %vm4507_vm8 = vcmp.gt.s32.totalorder %v3129_v33, 14  ;;  %v946_v39 = vsel %vm3374_vm4, %v3427_v2, -inf }
  0xdd   : > { %v963_v59 = vmax.f32 %v959_v16, %v962_v41  ;;  %vm3416_vm0 = vmand %vm4508_vm1, %vm4507_vm8  ;;  %vm4511_vm13 = vcmask 31744   ;;  %vm4513_vm1 = vcmp.gt.s32.totalorder %v3129_v33, 15  ;;  %v4515_v41 = vmov 0 }
  0xde   : > { %v4510_v49 = vsel %vm3416_vm0, 4294967295, %v4509_v49  ;;  %v964_v16 = vsel %vm4511_vm13, %v934_v51, -inf  ;;  %vm4512_vm8 = vmmov %vm4511_vm13  ;;  %v948_v0 = vsel %vm3396_vm15, %v3443_v50, -inf  ;;  %v950_v51 = vsel %vm3416_vm0, %v3449_v35, -inf }
  0xdf   : > { %v966_v34 = vsel %vm4512_vm8, %v936_v3, -inf  ;;  %vm3438_vm11 = vmand %vm4514_vm9, %vm4513_vm1  ;;  %v965_v3 = vmax.f32 %v961_v31, %v964_v16  ;;  %v972_v16 = vsel %vm4512_vm8, %v942_v61, -inf  ;;  %v4530_v61 = vsel %vm3166_vm3, %v3257_v54, -inf }
  0xe0   : > { %v4516_v41 = vsel %vm3438_vm11, 4294967295, %v4515_v41  ;;  %v967_v33 = vmax.f32 %v963_v59, %v966_v34  ;;  %v952_v13 = vsel %vm3438_vm11, %v3461_v18, -inf  ;;  %vm4519_vm9 = vmmov %vm4512_vm8  ;;  %vm4540_vm5 = vnez %v4478_v58 }
  0xe1   : > { %v968_v12 = vsel %vm4519_vm9, %v938_v20, -inf  ;;  %vm4520_vm13 = vmmov %vm4512_vm8 }
  0xe2   : > { %v970_v30 = vsel %vm4520_vm13, %v940_v56, -inf  ;;  %v969_v31 = vmax.f32 %v965_v3, %v968_v12  ;;  %vm4521_vm1 = vmmov %vm4512_vm8 }
  0xe3   : > { %v971_v59 = vmax.f32 %v967_v33, %v970_v30  ;;  %v974_v25 = vsel %vm4521_vm1, %v944_v8, -inf  ;;  %vm4522_vm12 = vmmov %vm4521_vm1  ;;  %v4526_v30 = vsel %vm3139_vm7, %v3223_v14, -inf  ;;  %v4528_v8 = vsel %vm3153_vm10, %v3235_v15, -inf }
  0xe4   : > { %v976_v34 = vsel %vm4522_vm12, %v946_v39, -inf  ;;  %vm4523_vm0 = vmmov %vm4521_vm1  ;;  %v973_v18 = vmax.f32 %v969_v31, %v972_v16  ;;  %v3514_v16 = vld [vmem:[%s1821_s7 + $0xc8] sm:$0xff]  ;;  %vm4547_vm1 = vnez %v4485_v32 }
  0xe5   : > { %v978_v48 = vsel %vm4523_vm0, %v948_v0, -inf  ;;  %vm4524_vm11 = vmmov %vm4523_vm0  ;;  %v975_v27 = vmax.f32 %v971_v59, %v974_v25  ;;  %v947_v40 = vsel %vm3374_vm4, %v3514_v16, -inf  ;;  %v3520_v25 = vld [vmem:[%s1821_s7 + $0xd8] sm:$0xff]  ;;  %vm4545_vm4 = vnez %v4481_v17 }
  0xe6   : > { %v980_v20 = vsel %vm4524_vm11, %v950_v51, -inf  ;;  %vm4525_vm9 = vmmov %vm4523_vm0  ;;  %v977_v33 = vmax.f32 %v973_v18, %v976_v34  ;;  %v949_v53 = vsel %vm3396_vm15, %v3520_v25, -inf  ;;  %vm4544_vm15 = vnez %v4516_v41 }
  0xe7   : > { %v982_v56 = vsel %vm4525_vm9, %v952_v13, -inf  ;;  %vm4527_vm13 = vmmov %vm4523_vm0  ;;  %v979_v31 = vmax.f32 %v975_v27, %v978_v48  ;;  %v4538_v48 = vsel %vm3218_vm2, %v3321_v43, -inf  ;;  %v4541_v27 = vsel %vm4540_vm5, %v3343_v11, -inf }
  0xe8   : > { %v985_v12 = vsel %vm4527_vm13, %v4526_v30, -inf  ;;  %vm4529_vm8 = vmmov %vm4523_vm0  ;;  %v981_v24 = vmax.f32 %v977_v33, %v980_v20  ;;  %vm4543_vm2 = vnez %v4510_v49  ;;  %vm4550_vm9 = vnez %v4491_v10 }
  0xe9   : > { %v986_v0 = vsel %vm4529_vm8, %v4528_v8, -inf  ;;  %vm4531_vm11 = vmmov %vm4523_vm0  ;;  %v983_v30 = vmax.f32 %v979_v31, %v982_v56  ;;  %v3547_v8 = vld [vmem:[%s1821_s7 + $0xf8] sm:$0xff]  ;;  %v4546_v56 = vsel %vm4545_vm4, %v3365_v57, -inf  ;;  %v4551_v41 = vsel %vm4550_vm9, %v3407_v42, -inf }
  0xea   : > { %v987_v13 = vsel %vm4531_vm11, %v4530_v61, -inf  ;;  %vm4533_vm7 = vmmov %vm4523_vm0  ;;  %v953_v20 = vsel %vm4544_vm15, %v3547_v8, -inf  ;;  %v4548_v61 = vsel %vm4547_vm1, %v3385_v36, -inf }
  0xeb   : > { %v989_v39 = vsel %vm4533_vm7, %v4532_v46, -inf  ;;  %vm4535_vm10 = vmmov %vm4523_vm0  ;;  %v988_v21 = vmax.f32 %v985_v12, %v987_v13  ;;  %v3541_v12 = vld [vmem:[%s1821_s7 + $0xe8] sm:$0xff]  ;;  %v3582_v10 = vmax.f32 %v981_v24, %v983_v30  ;;  %v1055_v30 = vstv %s2369_s27  ;;  %s1141_s27 = scalar_select %p2516_p1, 1, 0 }
  0xec   : > { %v991_v51 = vsel %vm4535_vm10, %v4534_v47, -inf  ;;  %vm4537_vm3 = vmmov %vm4523_vm0  ;;  %v990_v59 = vmax.f32 %v986_v0, %v989_v39  ;;  %v951_v58 = vsel %vm4543_vm2, %v3541_v12, -inf  ;;  %v999_v0 = vsel %vm4523_vm0, %v4546_v56, -inf }
  0xed   : > { %v993_v3 = vsel %vm4537_vm3, %v4536_v45, -inf  ;;  %vm4539_vm14 = vmmov %vm4523_vm0  ;;  %v992_v62 = vmax.f32 %v988_v21, %v991_v51  ;;  %v1018_v51 = vstv %s3469_s25  ;;  %v1021_v45 = vstv %s3472_s0 }
  0xee   : > { %v995_v18 = vsel %vm4539_vm14, %v4538_v48, -inf  ;;  %vm4542_vm6 = vmmov %vm4523_vm0  ;;  %v994_v6 = vmax.f32 %v990_v59, %v993_v3  ;;  %vm3585_vm10 = vcmp.ge.s32.totalorder %v1798_v1, %v1018_v51  ;;  %vm3592_vm5 = vcmp.lt.s32.totalorder %v1798_v1, %v1021_v45 }
  0xef   : > { %v997_v34 = vsel %vm4542_vm6, %v4541_v27, -inf  ;;  %vm4549_vm12 = vmmov %vm4523_vm0  ;;  %v996_v49 = vmax.f32 %v992_v62, %v995_v18  ;;  %vm3600_vm6 = vcmp.ge.s32.totalorder %v1824_v4, %v1018_v51  ;;  %vm3614_vm4 = vcmp.lt.s32.totalorder %v1824_v4, %v1021_v45 }
  0xf0   : > { %v1001_v13 = vsel %vm4549_vm12, %v4548_v61, -inf  ;;  %v998_v46 = vmax.f32 %v994_v6, %v997_v34  ;;  %vm4552_vm13 = vmmov %vm4523_vm0  ;;  %v1084_v62 = vstv %s3511_s13  ;;  %vm1056_vm1 = vcmp.lt.s32.totalorder %v1798_v1, %v1055_v30 }
  0xf1   : > { %v1003_v17 = vsel %vm4552_vm13, %v4551_v41, -inf  ;;  %vm4553_vm8 = vmmov %vm4523_vm0  ;;  %v1000_v3 = vmax.f32 %v996_v49, %v999_v0  ;;  %vm3630_vm12 = vcmp.lt.s32.totalorder %v1824_v4, %v1055_v30  ;;  %vm3637_vm13 = vcmp.ge.s32.totalorder %v1798_v1, %v1084_v62 }
  0xf2   : > { %v1005_v39 = vsel %vm4553_vm8, %v945_v28, -inf  ;;  %vm4554_vm11 = vmmov %vm4523_vm0  ;;  %v1002_v33 = vmax.f32 %v998_v46, %v1001_v13  ;;  %vm3642_vm8 = vcmp.ge.s32.totalorder %v1824_v4, %v1084_v62  ;;  %v1087_v41 = vstv %s3538_s28 }
  0xf3   : > { %v1007_v47 = vsel %vm4554_vm11, %v947_v40, -inf  ;;  %vm4555_vm7 = vmmov %vm4523_vm0  ;;  %v1052_v40 = vstv %s2366_s26  ;;  %v1116_v45 = vstv %s2401_s1  ;;  %s3742_s1 = sld [smem:[#allocation6 + %s1787_s22]] }
  0xf4   : > { %v1009_v32 = vsel %vm4555_vm7, %v949_v53, -inf  ;;  %vm4559_vm3 = vmmov %vm4523_vm0  ;;  %v1004_v53 = vmax.f32 %v1000_v3, %v1003_v17  ;;  %v1006_v48 = vmax.f32 %v1002_v33, %v1005_v39  ;;  %vm3609_vm15 = vcmp.ge.s32.totalorder %v1798_v1, %v1052_v40 }
  0xf5   : > { %v1011_v31 = vsel %vm4559_vm3, %v951_v58, -inf  ;;  %vm4560_vm14 = vmmov %vm4523_vm0  ;;  %vm3621_vm0 = vcmp.ge.s32.totalorder %v1824_v4, %v1052_v40  ;;  %v3663_v39 = vstv %s1044_s8  ;;  %v1119_v3 = vstv %s2404_s23  ;;  %s4017_s23 = sld [smem:[#allocation7 + %s1787_s22]] }
  0xf6   : > { %v1013_v21 = vsel %vm4560_vm14, %v953_v20, -inf  ;;  %vm1024_vm2 = vmand %vm3585_vm10, %vm3592_vm5  ;;  %v1008_v6 = vmax.f32 %v1004_v53, %v1007_v47  ;;  %v1010_v58 = vmax.f32 %v1006_v48, %v1009_v32  ;;  %vm3671_vm14 = vcmp.lt.s32.totalorder %v1824_v4, %v1087_v41  ;;  %s4052_s22 = sld [smem:[#allocation6 + %s2176_s12]] }
  0xf7   : > { %v1030_v20 = vsel %vm1024_vm2, %v3582_v10, -inf  ;;  %vm1058_vm9 = vmand %vm3609_vm15, %vm1056_vm1  ;;  %vm3690_vm1 = vcmp.ge.s32.totalorder %v1798_v1, %v1116_v45 }
  0xf8   : > { %v1012_v13 = vmax.f32 %v1008_v6, %v1011_v31  ;;  %v1014_v49 = vmax.f32 %v1010_v58, %v1013_v21  ;;  %vm1025_vm11 = vmand %vm3600_vm6, %vm3614_vm4  ;;  %v1064_v46 = vsel %vm1058_vm9, %v3582_v10, -inf  ;;  %vm3695_vm9 = vcmp.ge.s32.totalorder %v1824_v4, %v1116_v45 }
  0xf9   : > { %vm4578_vm7 = vmmov %vm4559_vm3  ;;  %vm1088_vm3 = vcmp.lt.s32.totalorder %v1798_v1, %v1087_v41  ;;  %vm1121_vm4 = vcmp.lt.s32.totalorder %v1824_v4, %v1119_v3  ;;  %v1078_v58 = vstv %s1077_s16 }
  0xfa   : > { %v1032_v17 = vsel %vm4578_vm7, %v1030_v20, -inf  ;;  %vm1059_vm10 = vmand %vm3621_vm0, %vm3630_vm12  ;;  %v1015_v32 = vmax.f32 %v1012_v13, %v1014_v49  ;;  %v1110_v20 = vstv %s1109_s17 }
  0xfb   : > { %vm4581_vm5 = vmmov %vm4578_vm7  ;;  %p1350_p11 = scmp.le.s32.totalorder %s4017_s23, %s3742_s1 }
  0xfc   : > { %v1066_v51 = vsel %vm4581_vm5, %v1064_v46, -inf  ;;  %vm1090_vm2 = vmand %vm3637_vm13, %vm1088_vm3  ;;  %vm3700_vm13 = vcmp.lt.s32.totalorder %v1798_v1, %v1119_v3  ;;  %v1031_v59 = vsel %vm1025_vm11, %v1015_v32, -inf  ;;  %v1065_v40 = vsel %vm1059_vm10, %v1015_v32, -inf  ;;  %p1447_p1 = scmp.le.s32.totalorder %s4055_s9, %s4052_s22 }
  0xfd   : > { %vm1091_vm15 = vmand %vm3642_vm8, %vm3671_vm14  ;;  %v1096_v33 = vsel %vm1090_vm2, %v3582_v10, -inf  ;;  %v3733_v3 = vstv %s2816_s3  ;;  %vm1046_vm10 = vcmp.eq.s32.totalorder %v3663_v39, 1  ;;  %vm1111_vm2 = vcmp.eq.s32.totalorder %v1110_v20, 1  ;;  %v4654_v20 = vld [vmem:[#allocation12_spill] sm:$0xff]  ;;  %p4130_p13 = por %p1350_p11, %p1349_p3 }
  0xfe   : > { %v1097_v53 = vsel %vm1091_vm15, %v1015_v32, -inf  ;;  %vm4588_vm8 = vmmov %vm4581_vm5  ;;  %p4181_p2 = por %p1447_p1, %p1349_p3 }
  0xff   : > { %v1098_v48 = vsel %vm4588_vm8, %v1096_v33, -inf  ;;  %vm1122_vm7 = vmand %vm3690_vm1, %vm3700_vm13  ;;  %vm1149_vm1 = vcmp.le.s32.totalorder %v3733_v3, 0  ;;  %vm1151_vm13 = vcmp.le.s32.totalorder %v3733_v3, 2  ;;  %vm1152_vm8 = vcmp.le.s32.totalorder %v3733_v3, 3 }
 0x100   : > { %vm4589_vm3 = vmmov %vm4581_vm5  ;;  %v1128_v6 = vsel %vm1122_vm7, %v3582_v10, -inf  ;;  %vm1079_vm5 = vcmp.eq.s32.totalorder %v1078_v58, 1  ;;  %s1449_s6 = scalar_select %p4181_p2, 1, 0 }
 0x101   : > { %v1033_v18 = vsel %vm4589_vm3, %v1031_v59, -inf  ;;  %vm4590_vm14 = vmmov %vm4589_vm3 }
 0x102   : > { %v1067_v27 = vsel %vm4590_vm14, %v1065_v40, -inf  ;;  %vm4591_vm6 = vmmov %vm4589_vm3  ;;  %v1034_v24 = vmax.f32 %v1032_v17, %v1033_v18  ;;  %v3730_v17 = vstv %s1141_s27 }
 0x103   : > { %v1099_v34 = vsel %vm4591_vm6, %v1097_v53, -inf  ;;  %v1068_v30 = vmax.f32 %v1066_v51, %v1067_v27  ;;  %vm1123_vm0 = vmand %vm3695_vm9, %vm1121_vm4  ;;  %vm1143_vm15 = vcmp.eq.s32.totalorder %v3730_v17, 1  ;;  %vm1150_vm9 = vcmp.le.s32.totalorder %v3733_v3, 1 }
 0x104   : > { %v1100_v62 = vmax.f32 %v1098_v48, %v1099_v34  ;;  %v1129_v56 = vsel %vm1123_vm0, %v1015_v32, -inf  ;;  %vm4592_vm12 = vmmov %vm4589_vm3  ;;  %v1035_v61 = vrot.slane %v1034_v24, 4 }
 0x105   : > { %v1130_v0 = vsel %vm4592_vm12, %v1128_v6, -inf  ;;  %v1069_v13 = vrot.slane %v1068_v30, 4  ;;  %vm4593_vm11 = vmmov %vm4589_vm3 }
 0x106   : > { %v1101_v49 = vrot.slane %v1100_v62, 4  ;;  %v1131_v46 = vsel %vm4593_vm11, %v1129_v56, -inf  ;;  %v1036_v47 = vmax.f32 %v1034_v24, %v1035_v61  ;;  %v3751_v24 = vstv %s2819_s14 }
 0x107   : > { %v1132_v41 = vmax.f32 %v1130_v0, %v1131_v46  ;;  %v1070_v51 = vmax.f32 %v1068_v30, %v1069_v13  ;;  %vm1166_vm11 = vcmp.gt.s32.totalorder %v3751_v24, 0  ;;  %vm1167_vm14 = vcmp.gt.s32.totalorder %v3751_v24, 1 }
 0x108   : > { %v1102_v45 = vmax.f32 %v1100_v62, %v1101_v49  ;;  %v1037_v32 = vrot.slane %v1036_v47, 2  ;;  %vm1168_vm4 = vcmp.gt.s32.totalorder %v3751_v24, 2  ;;  %vm1169_vm0 = vcmp.gt.s32.totalorder %v3751_v24, 3  ;;  %vm3761_vm3 = vmand %vm1149_vm1, %vm1166_vm11 }
 0x109   : > { %v1133_v10 = vrot.slane %v1132_v41, 4  ;;  %v1071_v33 = vrot.slane %v1070_v51, 2  ;;  %vm1170_vm6 = vcmp.gt.s32.totalorder %v3751_v24, 4  ;;  %vm3772_vm12 = vmand %vm1150_vm9, %vm1167_vm14  ;;  %vm4598_vm1 = vcmask 24576  }
 0x10a   : > { %v1103_v28 = vrot.slane %v1102_v45, 2  ;;  %v1038_v21 = vmax.f32 %v1036_v47, %v1037_v32  ;;  %vm4599_vm11 = vmmov %vm4598_vm1  ;;  %vm1180_vm14 = vcmp.gt.s32.totalorder %v3751_v24, 14  ;;  %v1231_v32 = vsel %vm3761_vm3, %v3223_v14, -inf }
 0x10b   : > { %v1134_v31 = vmax.f32 %v1132_v41, %v1133_v10  ;;  %v1072_v59 = vmax.f32 %v1070_v51, %v1071_v33  ;;  %vm4600_vm7 = vmmov %vm4598_vm1  ;;  %v1326_v41 = vstv %s3742_s1  ;;  %v1230_v10 = vsel %vm3761_vm3, %v3207_v22, -inf }
 0x10c   : > { %v1104_v40 = vmax.f32 %v1102_v45, %v1103_v28  ;;  %v1039_v48 = vrot.slane %v1038_v21, 1  ;;  %vm3789_vm9 = vmand %vm1151_vm13, %vm1168_vm4  ;;  %vm1178_vm13 = vcmp.gt.s32.totalorder %v3751_v24, 12  ;;  %vm1179_vm4 = vcmp.gt.s32.totalorder %v3751_v24, 13 }
 0x10d   : > { %v1135_v53 = vrot.slane %v1134_v31, 2  ;;  %v1073_v18 = vrot.slane %v1072_v59, 1  ;;  %v1232_v33 = vsel %vm3772_vm12, %v3229_v55, -inf  ;;  %v1233_v22 = vsel %vm3772_vm12, %v3235_v15, -inf }
 0x10e   : > { %v1105_v27 = vrot.slane %v1104_v40, 1  ;;  %v1040_v30 = vmax.f32 %v1038_v21, %v1039_v48  ;;  %v1234_v14 = vsel %vm3789_vm9, %v3251_v7, -inf  ;;  %v1235_v55 = vsel %vm3789_vm9, %v3257_v54, -inf }
 0x10f   : > { %v1136_v34 = vmax.f32 %v1134_v31, %v1135_v53  ;;  %v1074_v62 = vmax.f32 %v1072_v59, %v1073_v18  ;;  %vm4619_vm3 = vcmp.gt.s32.totalorder %v3751_v24, 8  ;;  %vm4623_vm12 = vcmp.gt.s32.totalorder %v3751_v24, 9 }
 0x110   : > { %v1106_v6 = vmax.f32 %v1104_v40, %v1105_v27  ;;  %v1047_v61 = vsel %vm1046_vm10, 0.0, %v1040_v30  ;;  %vm4605_vm10 = vcmp.le.s32.totalorder %v3733_v3, 4  ;;  %vm4624_vm9 = vcmp.le.s32.totalorder %v3733_v3, 9 }
 0x111   : > { %v1137_v56 = vrot.slane %v1136_v34, 1  ;;  %v1080_v13 = vsel %vm1079_vm5, 0.0, %v1074_v62  ;;  %1551 = vst.msk [vmem:[%s2643_s2 + $0x8] sm:$0x1] %vm4598_vm1, %v1047_v61  ;;  %vm4609_vm5 = vcmp.le.s32.totalorder %v3733_v3, 5 }
 0x112   : > { %v1112_v49 = vsel %vm1111_vm2, 0.0, %v1106_v6  ;;  %1552 = vst.msk [vmem:[%s2643_s2 + $0x9] sm:$0x1] %vm4599_vm11, %v1080_v13  ;;  %vm1171_vm2 = vcmp.gt.s32.totalorder %v3751_v24, 5  ;;  %vm3800_vm11 = vmand %vm1152_vm8, %vm1169_vm0 }
 0x113   : > { %1553 = vst.msk [vmem:[%s2643_s2 + $0xa] sm:$0x1] %vm4600_vm7, %v1112_v49  ;;  %v1138_v39 = vmax.f32 %v1136_v34, %v1137_v56  ;;  %vm1172_vm7 = vcmp.gt.s32.totalorder %v3751_v24, 6  ;;  %vm3815_vm8 = vmand %vm4605_vm10, %vm1170_vm6  ;;  %vm1181_vm6 = vcmp.gt.s32.totalorder %v3751_v24, 15  ;;  %vm4612_vm10 = vcmp.le.s32.totalorder %v3733_v3, 6 }
 0x114   : > { %vm4608_vm0 = vmmov %vm4598_vm1  ;;  %v1236_v31 = vsel %vm3800_vm11, %v3263_v9, -inf  ;;  %v1237_v15 = vsel %vm3800_vm11, %v3269_v29, -inf  ;;  %v1238_v7 = vsel %vm3815_vm8, %v3283_v26, -inf  ;;  %v1239_v54 = vsel %vm3815_vm8, %v3289_v60, -inf }
 0x115   : > { %v1144_v47 = vsel %vm1143_vm15, 0.0, %v1138_v39  ;;  %vm1177_vm15 = vcmp.gt.s32.totalorder %v3751_v24, 11  ;;  %vm3829_vm1 = vmand %vm4609_vm5, %vm1171_vm2  ;;  %vm4615_vm5 = vcmp.gt.s32.totalorder %v3751_v24, 7  ;;  %vm4616_vm2 = vcmp.le.s32.totalorder %v3733_v3, 7 }
 0x116   : > { %1554 = vst.msk [vmem:[%s2643_s2 + $0xb] sm:$0x1] %vm4608_vm0, %v1144_v47  ;;  %vm3838_vm0 = vmand %vm4612_vm10, %vm1172_vm7  ;;  %vm4620_vm10 = vcmp.le.s32.totalorder %v3733_v3, 8  ;;  %v1240_v9 = vsel %vm3829_vm1, %v3295_v23, -inf  ;;  %v1241_v29 = vsel %vm3829_vm1, %v3301_v19, -inf  ;;  %vm4627_vm11 = vcmask 31744  }
 0x117   : > { %vm3855_vm7 = vmand %vm4616_vm2, %vm4615_vm5  ;;  %v1242_v26 = vsel %vm3838_vm0, %v3315_v5, -inf  ;;  %v1243_v60 = vsel %vm3838_vm0, %v3321_v43, -inf  ;;  %v1262_v23 = vsel %vm4627_vm11, %v1230_v10, -inf  ;;  %vm4628_vm8 = vcmp.gt.s32.totalorder %v3751_v24, 10 }
 0x118   : > { %vm3875_vm5 = vmand %vm4620_vm10, %vm4619_vm3  ;;  %vm4629_vm3 = vcmp.le.s32.totalorder %v3733_v3, 10  ;;  %v1244_v19 = vsel %vm3855_vm7, %v3337_v37, -inf  ;;  %v1245_v5 = vsel %vm3855_vm7, %v3343_v11, -inf }
 0x119   : > { %vm3895_vm2 = vmand %vm4624_vm9, %vm4623_vm12  ;;  %vm4634_vm12 = vcmp.le.s32.totalorder %v3733_v3, 11  ;;  %v1246_v37 = vsel %vm3875_vm5, %v3359_v63, -inf  ;;  %v1247_v11 = vsel %vm3875_vm5, %v3365_v57, -inf  ;;  %vm4642_vm5 = vcmp.le.s32.totalorder %v3733_v3, 13 }
 0x11a   : > { %vm3913_vm10 = vmand %vm4629_vm3, %vm4628_vm8  ;;  %v1248_v30 = vsel %vm3895_vm2, %v3379_v52, -inf  ;;  %v1249_v63 = vsel %vm3895_vm2, %v3385_v36, -inf  ;;  %vm4646_vm2 = vcmp.le.s32.totalorder %v3733_v3, 14 }
 0x11b   : > { %vm4632_vm1 = vmmov %vm4627_vm11  ;;  %vm4638_vm11 = vcmp.le.s32.totalorder %v3733_v3, 12  ;;  %v1250_v56 = vsel %vm3913_vm10, %v3401_v44, -inf  ;;  %v1251_v52 = vsel %vm3913_vm10, %v3407_v42, -inf  ;;  %vm4650_vm10 = vcmp.le.s32.totalorder %v3733_v3, 15  ;;  %v4655_v3 = vld [vmem:[#allocation14_spill] sm:$0xff] }
 0x11c   : > { %v1263_v43 = vsel %vm4632_vm1, %v1232_v33, -inf  ;;  %vm4633_vm0 = vmmov %vm4632_vm1 }
 0x11d   : > { %v1264_v53 = vsel %vm4633_vm0, %v1234_v14, -inf  ;;  %vm3929_vm9 = vmand %vm4634_vm12, %vm1177_vm15 }
 0x11e   : > { %v1265_v18 = vmax.f32 %v1262_v23, %v1264_v53  ;;  %vm4637_vm7 = vmmov %vm4633_vm0  ;;  %v1252_v13 = vsel %vm3929_vm9, %v3421_v38, -inf  ;;  %v1253_v24 = vsel %vm3929_vm9, %v4654_v20, -inf }
 0x11f   : > { %v1266_v27 = vsel %vm4637_vm7, %v1236_v31, -inf  ;;  %vm3944_vm8 = vmand %vm4638_vm11, %vm1178_vm13 }
 0x120   : > { %v1267_v57 = vmax.f32 %v1263_v43, %v1266_v27  ;;  %vm4641_vm15 = vmmov %vm4633_vm0  ;;  %v1254_v44 = vsel %vm3944_vm8, %v3427_v2, -inf }
 0x121   : > { %v1268_v62 = vsel %vm4641_vm15, %v1238_v7, -inf  ;;  %vm3959_vm3 = vmand %vm4642_vm5, %vm1179_vm4 }
 0x122   : > { %v1269_v36 = vmax.f32 %v1265_v18, %v1268_v62  ;;  %vm4645_vm13 = vmmov %vm4633_vm0  ;;  %v1256_v39 = vsel %vm3959_vm3, %v3443_v50, -inf }
 0x123   : > { %v1270_v0 = vsel %vm4645_vm13, %v1240_v9, -inf  ;;  %vm3974_vm1 = vmand %vm4646_vm2, %vm1180_vm14 }
 0x124   : > { %v1271_v42 = vmax.f32 %v1267_v57, %v1270_v0  ;;  %vm4649_vm4 = vmmov %vm4633_vm0  ;;  %v1258_v38 = vsel %vm3974_vm1, %v3449_v35, -inf  ;;  %v1329_v0 = vstv %s4017_s23 }
 0x125   : > { %v1272_v49 = vsel %vm4649_vm4, %v1242_v26, -inf  ;;  %vm3989_vm0 = vmand %vm4650_vm10, %vm1181_vm6 }
 0x126   : > { %v1273_v2 = vmax.f32 %v1269_v36, %v1272_v49  ;;  %vm4653_vm14 = vmmov %vm4649_vm4  ;;  %v1260_v47 = vsel %vm3989_vm0, %v4655_v3, -inf  ;;  %v1261_v34 = vsel %vm3989_vm0, %v3547_v8, -inf }
 0x127   : > { %v1274_v58 = vsel %vm4653_vm14, %v1244_v19, -inf  ;;  %vm4656_vm6 = vmmov %vm4649_vm4 }
 0x128   : > { %v1275_v51 = vmax.f32 %v1271_v42, %v1274_v58  ;;  %v1276_v17 = vsel %vm4656_vm6, %v1246_v37, -inf  ;;  %vm4657_vm12 = vmmov %vm4649_vm4 }
 0x129   : > { %v1277_v50 = vmax.f32 %v1273_v2, %v1276_v17  ;;  %v1278_v45 = vsel %vm4657_vm12, %v1248_v30, -inf  ;;  %vm4658_vm7 = vmmov %vm4649_vm4  ;;  %v1392_v2 = vstv %s2840_s29 }
 0x12a   : > { %v1280_v35 = vsel %vm4658_vm7, %v1250_v56, -inf  ;;  %vm4659_vm11 = vmmov %vm4649_vm4  ;;  %v1279_v33 = vmax.f32 %v1275_v51, %v1278_v45 }
 0x12b   : > { %v1282_v10 = vsel %vm4659_vm11, %v1252_v13, -inf  ;;  %vm4660_vm15 = vmmov %vm4649_vm4  ;;  %v1281_v21 = vmax.f32 %v1277_v50, %v1280_v35  ;;  %v1360_v13 = vstv %s2830_s15  ;;  %v1395_v35 = vstv %s2843_s24  ;;  %s1352_s15 = scalar_select %p4130_p13, 1, 0 }
 0x12c   : > { %v1284_v28 = vsel %vm4660_vm15, %v1254_v44, -inf  ;;  %vm4661_vm5 = vmmov %vm4649_vm4  ;;  %v1283_v26 = vmax.f32 %v1279_v33, %v1282_v10  ;;  %s1417_s24 = scalar_select %p2917_p7, 1, 0 }
 0x12d   : > { %v1286_v14 = vsel %vm4661_vm5, %v1256_v39, -inf  ;;  %vm4662_vm9 = vmmov %vm4649_vm4  ;;  %v1285_v43 = vmax.f32 %v1281_v21, %v1284_v28 }
 0x12e   : > { %v1288_v31 = vsel %vm4662_vm9, %v1258_v38, -inf  ;;  %vm4663_vm13 = vmmov %vm4649_vm4  ;;  %v1287_v18 = vmax.f32 %v1283_v26, %v1286_v14  ;;  %v1424_v14 = vstv %s4052_s22 }
 0x12f   : > { %v1290_v7 = vsel %vm4663_vm13, %v1260_v47, -inf  ;;  %vm4664_vm2 = vmmov %vm4649_vm4  ;;  %vm4046_vm13 = vcmp.ge.s32.totalorder %v1798_v1, %v1326_v41 }
 0x130   : > { %v1293_v9 = vsel %vm4664_vm2, %v1231_v32, -inf  ;;  %vm4665_vm4 = vmmov %vm4664_vm2  ;;  %v1255_v32 = vsel %vm3944_vm8, %v3514_v16, -inf  ;;  %v1291_v16 = vmax.f32 %v1287_v18, %v1290_v7 }
 0x131   : > { %v1294_v59 = vsel %vm4665_vm4, %v1233_v22, -inf  ;;  %vm4666_vm10 = vmmov %vm4664_vm2  ;;  %vm1330_vm4 = vcmp.lt.s32.totalorder %v1798_v1, %v1329_v0 }
 0x132   : > { %v1295_v23 = vsel %vm4666_vm10, %v1235_v55, -inf  ;;  %vm4667_vm14 = vmmov %vm4664_vm2  ;;  %v1257_v55 = vsel %vm3959_vm3, %v3520_v25, -inf  ;;  %vm4064_vm10 = vcmp.ge.s32.totalorder %v1824_v4, %v1326_v41  ;;  %v1363_v41 = vstv %s2833_s21  ;;  %s1385_s21 = scalar_select %p2910_p6, 1, 0 }
 0x133   : > { %v1297_v40 = vsel %vm4667_vm14, %v1237_v15, -inf  ;;  %vm4668_vm6 = vmmov %vm4664_vm2  ;;  %v1296_v53 = vmax.f32 %v1293_v9, %v1295_v23  ;;  %v1289_v15 = vmax.f32 %v1285_v43, %v1288_v31  ;;  %v1427_v31 = vstv %s4055_s9 }
 0x134   : > { %v1299_v19 = vsel %vm4668_vm6, %v1239_v54, -inf  ;;  %v1298_v48 = vmax.f32 %v1294_v59, %v1297_v40  ;;  %vm4669_vm12 = vmmov %vm4664_vm2  ;;  %vm4071_vm6 = vcmp.ge.s32.totalorder %v1798_v1, %v1360_v13 }
 0x135   : > { %v1301_v37 = vsel %vm4669_vm12, %v1241_v29, -inf  ;;  %vm4670_vm7 = vmmov %vm4664_vm2  ;;  %v1300_v54 = vmax.f32 %v1296_v53, %v1299_v19  ;;  %v1259_v29 = vsel %vm3974_vm1, %v3541_v12, -inf  ;;  %vm4076_vm12 = vcmp.lt.s32.totalorder %v1824_v4, %v1329_v0 }
 0x136   : > { %v1303_v22 = vsel %vm4670_vm7, %v1243_v60, -inf  ;;  %vm4671_vm11 = vmmov %vm4664_vm2  ;;  %v1302_v30 = vmax.f32 %v1298_v48, %v1301_v37  ;;  %vm4081_vm7 = vcmp.ge.s32.totalorder %v1824_v4, %v1360_v13 }
 0x137   : > { %v1305_v27 = vsel %vm4671_vm11, %v1245_v5, -inf  ;;  %vm4672_vm8 = vmmov %vm4664_vm2  ;;  %v1304_v25 = vmax.f32 %v1300_v54, %v1303_v22  ;;  %vm1364_vm11 = vcmp.lt.s32.totalorder %v1798_v1, %v1363_v41 }
 0x138   : > { %v1307_v60 = vsel %vm4672_vm8, %v1247_v11, -inf  ;;  %vm4673_vm15 = vmmov %vm4664_vm2  ;;  %v1306_v57 = vmax.f32 %v1302_v30, %v1305_v27  ;;  %vm4091_vm8 = vcmp.lt.s32.totalorder %v1824_v4, %v1363_v41 }
 0x139   : > { %v1309_v5 = vsel %vm4673_vm15, %v1249_v63, -inf  ;;  %vm4674_vm3 = vmmov %vm4664_vm2  ;;  %v1292_v63 = vmax.f32 %v1289_v15, %v1291_v16  ;;  %v1308_v8 = vmax.f32 %v1304_v25, %v1307_v60 }
 0x13a   : > { %v1311_v62 = vsel %vm4674_vm3, %v1251_v52, -inf  ;;  %vm4675_vm5 = vmmov %vm4664_vm2  ;;  %v1310_v36 = vmax.f32 %v1306_v57, %v1309_v5  ;;  %vm4098_vm3 = vcmp.ge.s32.totalorder %v1798_v1, %v1392_v2 }
 0x13b   : > { %v1313_v6 = vsel %vm4675_vm5, %v1253_v24, -inf  ;;  %vm4676_vm9 = vmmov %vm4664_vm2  ;;  %v1312_v44 = vmax.f32 %v1308_v8, %v1311_v62  ;;  %vm4103_vm5 = vcmp.ge.s32.totalorder %v1824_v4, %v1392_v2  ;;  %v1353_v62 = vstv %s1352_s15 }
 0x13c   : > { %v1315_v12 = vsel %vm4676_vm9, %v1255_v32, -inf  ;;  %vm4677_vm1 = vmmov %vm4664_vm2  ;;  %v1314_v42 = vmax.f32 %v1310_v36, %v1313_v6  ;;  %v1386_v6 = vstv %s1385_s21  ;;  %v1418_v8 = vstv %s1417_s24 }
 0x13d   : > { %v1317_v56 = vsel %vm4677_vm1, %v1257_v55, -inf  ;;  %vm4680_vm0 = vmmov %vm4677_vm1  ;;  %v1316_v58 = vmax.f32 %v1312_v44, %v1315_v12  ;;  %v1450_v44 = vstv %s1449_s6 }
 0x13e   : > { %v1319_v52 = vsel %vm4680_vm0, %v1259_v29, -inf  ;;  %vm4681_vm2 = vmmov %vm4680_vm0  ;;  %v1318_v20 = vmax.f32 %v1314_v42, %v1317_v56 }
 0x13f   : > { %v1321_v61 = vsel %vm4681_vm2, %v1261_v34, -inf  ;;  %vm1332_vm14 = vmand %vm4046_vm13, %vm1330_vm4  ;;  %v1320_v17 = vmax.f32 %v1316_v58, %v1319_v52  ;;  %vm1397_vm2 = vcmp.lt.s32.totalorder %v1824_v4, %v1395_v35 }
 0x140   : > { %v1338_v24 = vsel %vm1332_vm14, %v1292_v63, -inf  ;;  %vm1366_vm15 = vmand %vm4071_vm6, %vm1364_vm11  ;;  %v1322_v50 = vmax.f32 %v1318_v20, %v1321_v61  ;;  %vm4142_vm11 = vcmp.ge.s32.totalorder %v1824_v4, %v1424_v14 }
 0x141   : > { %vm1333_vm9 = vmand %vm4064_vm10, %vm4076_vm12  ;;  %v1372_v45 = vsel %vm1366_vm15, %v1292_v63, -inf  ;;  %vm1429_vm10 = vcmp.lt.s32.totalorder %v1824_v4, %v1427_v31 }
 0x142   : > { %vm4696_vm1 = vmmov %vm4680_vm0  ;;  %vm1396_vm0 = vcmp.lt.s32.totalorder %v1798_v1, %v1395_v35  ;;  %v1323_v33 = vmax.f32 %v1320_v17, %v1322_v50 }
 0x143   : > { %v1340_v10 = vsel %vm4696_vm1, %v1338_v24, -inf  ;;  %vm1367_vm13 = vmand %vm4081_vm7, %vm4091_vm8  ;;  %vm4137_vm7 = vcmp.ge.s32.totalorder %v1798_v1, %v1424_v14  ;;  %vm4147_vm8 = vcmp.lt.s32.totalorder %v1798_v1, %v1427_v31 }
 0x144   : > { %vm4697_vm4 = vmmov %vm4696_vm1  ;;  %v1339_v26 = vsel %vm1333_vm9, %v1323_v33, -inf  ;;  %v1373_v23 = vsel %vm1367_vm13, %v1323_v33, -inf }
 0x145   : > { %v1374_v28 = vsel %vm4697_vm4, %v1372_v45, -inf  ;;  %vm1398_vm14 = vmand %vm4098_vm3, %vm1396_vm0  ;;  %v1375_v43 = vsel %vm4696_vm1, %v1373_v23, -inf  ;;  %vm1387_vm4 = vcmp.eq.s32.totalorder %v1386_v6, 1 }
 0x146   : > { %vm1399_vm6 = vmand %vm4103_vm5, %vm1397_vm2  ;;  %v1404_v21 = vsel %vm1398_vm14, %v1292_v63, -inf  ;;  %v1376_v37 = vmax.f32 %v1374_v28, %v1375_v43  ;;  %vm1354_vm2 = vcmp.eq.s32.totalorder %v1353_v62, 1  ;;  %vm1419_vm14 = vcmp.eq.s32.totalorder %v1418_v8, 1 }
 0x147   : > { %v1405_v40 = vsel %vm1399_vm6, %v1323_v33, -inf  ;;  %vm4705_vm15 = vmmov %vm4696_vm1  ;;  %vm1451_vm6 = vcmp.eq.s32.totalorder %v1450_v44, 1 }
 0x148   : > { %v1406_v19 = vsel %vm4705_vm15, %v1404_v21, -inf  ;;  %vm1430_vm3 = vmand %vm4137_vm7, %vm4147_vm8  ;;  %v1377_v4 = vrot.slane %v1376_v37, 4  ;;  %vm4712_vm7 = vcmask 24576  }
 0x149   : > { %vm4706_vm5 = vmmov %vm4696_vm1  ;;  %v1436_v18 = vsel %vm1430_vm3, %v1292_v63, -inf }
 0x14a   : > { %v1341_v1 = vsel %vm4706_vm5, %v1339_v26, -inf  ;;  %vm4707_vm0 = vmmov %vm4696_vm1  ;;  %v1378_v16 = vmax.f32 %v1376_v37, %v1377_v4 }
 0x14b   : > { %v1407_v53 = vsel %vm4707_vm0, %v1405_v40, -inf  ;;  %v1342_v48 = vmax.f32 %v1340_v10, %v1341_v1  ;;  %vm1431_vm12 = vmand %vm4142_vm11, %vm1429_vm10 }
 0x14c   : > { %v1408_v32 = vmax.f32 %v1406_v19, %v1407_v53  ;;  %v1437_v22 = vsel %vm1431_vm12, %v1323_v33, -inf  ;;  %vm4709_vm9 = vmmov %vm4707_vm0  ;;  %v1379_v25 = vrot.slane %v1378_v16, 2 }
 0x14d   : > { %v1438_v27 = vsel %vm4709_vm9, %v1436_v18, -inf  ;;  %v1343_v55 = vrot.slane %v1342_v48, 4  ;;  %vm4710_vm13 = vmmov %vm4707_vm0 }
 0x14e   : > { %v1409_v15 = vrot.slane %v1408_v32, 4  ;;  %v1439_v54 = vsel %vm4710_vm13, %v1437_v22, -inf  ;;  %v1380_v11 = vmax.f32 %v1378_v16, %v1379_v25  ;;  %vm4713_vm11 = vmmov %vm4712_vm7 }
 0x14f   : > { %v1440_v30 = vmax.f32 %v1438_v27, %v1439_v54  ;;  %v1344_v29 = vmax.f32 %v1342_v48, %v1343_v55  ;;  %vm4714_vm8 = vmmov %vm4712_vm7 }
 0x150   : > { %v1410_v60 = vmax.f32 %v1408_v32, %v1409_v15  ;;  %v1381_v52 = vrot.slane %v1380_v11, 1  ;;  %vm4715_vm15 = vmmov %vm4712_vm7 }
 0x151   : > { %v1441_v5 = vrot.slane %v1440_v30, 4  ;;  %v1345_v34 = vrot.slane %v1344_v29, 2 }
 0x152   : > { %v1411_v57 = vrot.slane %v1410_v60, 2  ;;  %v1382_v49 = vmax.f32 %v1380_v11, %v1381_v52 }
 0x153   : > { %v1442_v12 = vmax.f32 %v1440_v30, %v1441_v5  ;;  %v1346_v56 = vmax.f32 %v1344_v29, %v1345_v34 }
 0x154   : > { %v1412_v63 = vmax.f32 %v1410_v60, %v1411_v57  ;;  %v1388_v41 = vsel %vm1387_vm4, 0.0, %v1382_v49 }
 0x155   : > { %v1443_v36 = vrot.slane %v1442_v12, 2  ;;  %v1347_v0 = vrot.slane %v1346_v56, 1  ;;  %1556 = vst.msk [vmem:[%s2643_s2 + $0xd] sm:$0x1] %vm4713_vm11, %v1388_v41 }
 0x156   : > { %v1413_v61 = vrot.slane %v1412_v63, 1 }
 0x157   : > { %v1444_v13 = vmax.f32 %v1442_v12, %v1443_v36  ;;  %v1348_v42 = vmax.f32 %v1346_v56, %v1347_v0 }
 0x158   : > { %v1414_v46 = vmax.f32 %v1412_v63, %v1413_v61 }
 0x159   : > { %v1445_v39 = vrot.slane %v1444_v13, 1  ;;  %v1355_v38 = vsel %vm1354_vm2, 0.0, %v1348_v42 }
 0x15a   : > { %v1420_v2 = vsel %vm1419_vm14, 0.0, %v1414_v46  ;;  %1555 = vst.msk [vmem:[%s2643_s2 + $0xc] sm:$0x1] %vm4712_vm7, %v1355_v38 }
 0x15b   : > { %1557 = vst.msk [vmem:[%s2643_s2 + $0xe] sm:$0x1] %vm4714_vm8, %v1420_v2  ;;  %v1446_v58 = vmax.f32 %v1444_v13, %v1445_v39 }
 0x15d   : > { %v1452_v20 = vsel %vm1451_vm6, 0.0, %v1446_v58 }
 0x15e   : > { %1558 = vst.msk [vmem:[%s2643_s2 + $0xf] sm:$0x1] %vm4715_vm15, %v1452_v20 }
 0x15f PF: > { %s4716_s3 = sld [smem:[#allocation10_spill]]  ;;  %s4717_s18 = sld [smem:[#allocation9_spill]] }
 0x160   : > { %s4718_s19 = sld [smem:[#allocation11_spill]] }
 0x165   : > { %s38_s20 = sadd.s32 1, %s4716_s3  }
 0x166   : > { %p35_p3 = scmp.ge.s32.totalorder %s38_s20, 8  }
 0x168   :  { %37 = sbr.rel (!%p35_p3) target bundleno = 59 (0x3b), region = 57 }

</bundles_post_ra>
